<compile_context>
chip_gen: v6e
topology: v6e:2x2x1
jax: 0.10.0
libtpu: 0.0.40
codegen_flags: <defaults>
</compile_context>

<pallas_src>
import functools

import jax
import jax.numpy as jnp
from jax.experimental import pallas as pl
from jax.experimental.pallas import tpu as pltpu


# ----------------------------------------------------------------------------
# Tiled matmul + bias (K-tiled): (N, K)bf16 @ (K, M)bf16 + (1, M)f32 -> (N, M)f32
# Used for the vocab head.
# ----------------------------------------------------------------------------
def _matmul_bias_kernel(x_ref, w_ref, b_ref, o_ref, acc_ref):
    @pl.when(pl.program_id(2) == 0)
    def _():
        acc_ref[...] = jnp.zeros_like(acc_ref)

    acc_ref[...] += jnp.dot(x_ref[...], w_ref[...],
                            preferred_element_type=jnp.float32)

    @pl.when(pl.program_id(2) == pl.num_programs(2) - 1)
    def _():
        o_ref[...] = acc_ref[...] + b_ref[...]


def matmul_bias(x, w, b, *, tm=256, tn=512, tk=512):
    """x: (N, K) bf16, w: (K, M) bf16, b: (1, M) f32 -> (N, M) f32."""
    N, K = x.shape
    M = w.shape[1]
    # 256-aligned tiles are ideal on v6e/v7x (256x256 MXU); the clamps only kick
    # in for small demo shapes.  Non-divisible real shapes would need padding.
    tm, tn, tk = min(tm, N), min(tn, M), min(tk, K)
    assert N % tm == 0 and M % tn == 0 and K % tk == 0, \
        "dims must divide tile sizes (pad for real shapes)"
    grid = (N // tm, M // tn, K // tk)
    return pl.pallas_call(
        _matmul_bias_kernel,
        out_shape=jax.ShapeDtypeStruct((N, M), jnp.float32),
        grid_spec=pltpu.PrefetchScalarGridSpec(
            num_scalar_prefetch=0,
            grid=grid,
            in_specs=[
                pl.BlockSpec((tm, tk), lambda i, j, k: (i, k)),
                pl.BlockSpec((tk, tn), lambda i, j, k: (k, j)),
                pl.BlockSpec((1, tn), lambda i, j, k: (0, j)),
            ],
            out_specs=pl.BlockSpec((tm, tn), lambda i, j, k: (i, j)),
            scratch_shapes=[pltpu.VMEM((tm, tn), jnp.float32)],
        ),
        compiler_params=pltpu.CompilerParams(
            dimension_semantics=("parallel", "parallel", "arbitrary")),
    )(x, w, b)


# ----------------------------------------------------------------------------
# Fused LSTM kernel: grid over timestep blocks (ts steps each).  The per-block
# input projection (ts*B, E) @ W_ih + b runs once at the top of the block; the
# unrolled inner step does only h @ W_hh plus elementwise gate math.  h/c are
# carried in the VMEM-resident hn/cn output blocks (constant index_map).
# ----------------------------------------------------------------------------
def _sigmoid_tanh(x):
    # sigmoid(x) = 0.5 * tanh(0.5 * x) + 0.5 -- single EUP op instead of exp+recip.
    return 0.5 * jnp.tanh(0.5 * x) + 0.5


def _lstm_kernel(emb_ref, h0_ref, c0_ref, wih_ref, whh_ref, b_ref,
                 out_ref, hn_ref, cn_ref, *, ts, batch, hidden_size):
    H = hidden_size
    B = batch

    @pl.when(pl.program_id(0) == 0)
    def _():
        hn_ref[...] = h0_ref[...]
        cn_ref[...] = c0_ref[...]

    # Fused input projection for all ts timesteps of this block: one MXU-friendly
    # bf16 matmul, bias broadcast added once (replaces the old standalone kernel
    # and its f32 (S, B, 4H) HBM round trip).
    gx = jnp.dot(emb_ref[...], wih_ref[...],
                 preferred_element_type=jnp.float32) + b_ref[...]   # (ts*B, 4H) f32

    h = hn_ref[...]            # (B, H) f32 (resident carry)
    c = cn_ref[...]            # (B, H) f32 (resident carry)

    # Static unroll; keep ts <= 8 to bound vreg live ranges / code size.
    # TODO(synk): the recurrence is latency-bound at small B (MXU <5% utilized);
    # interleaving two independent batch tiles per step would roughly double
    # throughput but is not worthwhile at B=8 (sublane-alignment floor).
    for i in range(ts):
        gates = gx[i * B:(i + 1) * B, :] + jnp.dot(
            h.astype(jnp.bfloat16), whh_ref[...],
            preferred_element_type=jnp.float32)                     # (B, 4H) f32
        i_g = _sigmoid_tanh(gates[:, 0 * H:1 * H])
        f_g = _sigmoid_tanh(gates[:, 1 * H:2 * H])
        g_g = jnp.tanh(gates[:, 2 * H:3 * H])
        o_g = _sigmoid_tanh(gates[:, 3 * H:4 * H])
        c = f_g * c + i_g * g_g
        h = o_g * jnp.tanh(c)
        out_ref[i * B:(i + 1) * B, :] = h.astype(out_ref.dtype)     # bf16 store

    hn_ref[...] = h
    cn_ref[...] = c


def lstm_forward(emb_flat, h0, c0, wih, whh, b_gates, *, batch, ts=8):
    """emb_flat: (S*B, E) bf16 (seq-major, batch-minor); h0/c0: (B, H) f32;
    wih: (E, 4H) bf16; whh: (H, 4H) bf16; b_gates: (1, 4H) f32.
    Returns out: (S*B, H) bf16, h_n/c_n: (B, H) f32."""
    NB, E = emb_flat.shape
    B = batch
    S = NB // B
    H = h0.shape[-1]
    G = 4 * H
    ts = min(ts, S)
    assert S % ts == 0, "seq_len must be a multiple of the timestep block"
    kernel = functools.partial(_lstm_kernel, ts=ts, batch=B, hidden_size=H)
    out, hn, cn = pl.pallas_call(
        kernel,
        out_shape=[
            jax.ShapeDtypeStruct((S * B, H), jnp.bfloat16),
            jax.ShapeDtypeStruct((B, H), jnp.float32),
            jax.ShapeDtypeStruct((B, H), jnp.float32),
        ],
        grid_spec=pltpu.PrefetchScalarGridSpec(
            num_scalar_prefetch=0,
            grid=(S // ts,),
            in_specs=[
                pl.BlockSpec((ts * B, E), lambda t: (t, 0)),   # embeddings (streamed)
                pl.BlockSpec((B, H), lambda t: (0, 0)),        # h0 (resident)
                pl.BlockSpec((B, H), lambda t: (0, 0)),        # c0 (resident)
                pl.BlockSpec((E, G), lambda t: (0, 0)),        # W_ih (resident, bf16)
                pl.BlockSpec((H, G), lambda t: (0, 0)),        # W_hh (resident, bf16)
                pl.BlockSpec((1, G), lambda t: (0, 0)),        # b_ih + b_hh (resident)
            ],
            out_specs=[
                pl.BlockSpec((ts * B, H), lambda t: (t, 0)),   # bf16 output sequence
                pl.BlockSpec((B, H), lambda t: (0, 0)),        # h_n (resident carry)
                pl.BlockSpec((B, H), lambda t: (0, 0)),        # c_n (resident carry)
            ],
        ),
        compiler_params=pltpu.CompilerParams(
            dimension_semantics=("arbitrary",)),   # sequential recurrence
        # TODO(synk): on v7x, add a leading "parallel" batch-tile grid axis to use
        # both TensorCores and single-buffer the resident W_ih/W_hh blocks
        # (pipeline_mode=pl.Buffered(1)) so large H fits 64 MiB VMEM.
    )(emb_flat, h0, c0, wih, whh, b_gates)
    return out, hn, cn


# ----------------------------------------------------------------------------
# Model wrapper (deterministic synthetic parameters), matching the PyTorch
# RNNModel forward: embed -> LSTM -> linear(output.view(-1, H)).
# ----------------------------------------------------------------------------
class RNNModelPallas:
    def __init__(self, hidden_size, embedding_size, vocab_size, key):
        assert hidden_size % 128 == 0 and embedding_size % 128 == 0 \
            and vocab_size % 128 == 0, "demo keeps feature dims 128-aligned"
        self.hidden_size = hidden_size
        k = jax.random.split(key, 6)
        bound = 1.0 / jnp.sqrt(hidden_size)
        # nn.Embedding(V, E): weight (V, E).  Stored bf16 so the gather emits
        # bf16 activations directly (half the HBM traffic on the embed path).
        self.embed_w = jax.random.normal(
            k[0], (vocab_size, embedding_size), jnp.float32).astype(jnp.bfloat16)
        # nn.LSTM(E, H): weight_ih (4H, E), weight_hh (4H, H) -> stored transposed,
        # bf16 for the MXU.  Gate order [i, f, g, o] as in PyTorch.
        self.wih = jax.random.uniform(
            k[1], (embedding_size, 4 * hidden_size), jnp.float32,
            -bound, bound).astype(jnp.bfloat16)
        self.whh = jax.random.uniform(
            k[2], (hidden_size, 4 * hidden_size), jnp.float32,
            -bound, bound).astype(jnp.bfloat16)
        b_ih = jax.random.uniform(k[3], (4 * hidden_size,), jnp.float32,
                                  -bound, bound)
        b_hh = jax.random.uniform(k[4], (4 * hidden_size,), jnp.float32,
                                  -bound, bound)
        self.b_gates = (b_ih + b_hh).reshape(1, 4 * hidden_size)       # f32
        # nn.Linear(H, V): weight (V, H) -> stored transposed (H, V) bf16
        self.lin_w_t = jax.random.uniform(
            k[5], (hidden_size, vocab_size), jnp.float32,
            -bound, bound).astype(jnp.bfloat16)
        self.lin_b = jnp.zeros((1, vocab_size), jnp.float32)

    def init_hidden(self, batch_size):
        z = jnp.zeros((1, batch_size, self.hidden_size), jnp.float32)
        return (z, z)

    def forward(self, x, hidden):
        # x: (S, B) int32 token ids (seq-first, like nn.LSTM batch_first=False)
        S, B = x.shape
        # Embedding gather stays in plain JAX glue (not a Pallas kernel).
        # Flattened seq-major / batch-minor, matching output.view(-1, H) ordering.
        emb = jnp.take(self.embed_w, x.reshape(S * B), axis=0)         # (S*B, E) bf16
        h0, c0 = hidden                                                # each (1, B, H)
        out, hn, cn = lstm_forward(emb, h0[0], c0[0], self.wih, self.whh,
                                   self.b_gates, batch=B)
        # Vocab head: `out` is already a lane-dense (S*B, H) bf16 slab.
        out_vocab = matmul_bias(out, self.lin_w_t, self.lin_b)         # (S*B, V) f32
        return out_vocab, (hn[None, :, :], cn[None, :, :])


if __name__ == "__main__":
    vocab_size = 256
    embedding_size = 128
    hidden_size = 128
    batch = 8
    seq_len = 16

    key = jax.random.PRNGKey(0)
    k_param, k_tok = jax.random.split(key)

    model = RNNModelPallas(hidden_size, embedding_size, vocab_size, k_param)
    x = jax.random.randint(k_tok, (seq_len, batch), 0, vocab_size, jnp.int32)
    hidden = model.init_hidden(batch)

    out_vocab, (hn, cn) = model.forward(x, hidden)
    jax.block_until_ready((out_vocab, hn, cn))

    assert out_vocab.shape == (seq_len * batch, vocab_size)
    assert out_vocab.dtype == jnp.float32
    assert hn.shape == (1, batch, hidden_size)
    assert cn.shape == (1, batch, hidden_size)
    print("KERNEL_OK")
</pallas_src>

<mosaic_0001>
module attributes {stable_mosaic.version = 11 : i64} {
  func.func @_lstm_kernel(%arg0: i32, %arg1: memref<64x128xbf16, #tpu.memory_space<vmem>>, %arg2: memref<8x128xf32, #tpu.memory_space<vmem>>, %arg3: memref<8x128xf32, #tpu.memory_space<vmem>>, %arg4: memref<128x512xbf16, #tpu.memory_space<vmem>>, %arg5: memref<128x512xbf16, #tpu.memory_space<vmem>>, %arg6: memref<1x512xf32, #tpu.memory_space<vmem>>, %arg7: memref<64x128xbf16, #tpu.memory_space<vmem>>, %arg8: memref<8x128xf32, #tpu.memory_space<vmem>>, %arg9: memref<8x128xf32, #tpu.memory_space<vmem>>) attributes {dimension_semantics = [#tpu.dimension_semantics<arbitrary>], iteration_bounds = array<i64: 2>, scalar_prefetch = 0 : i64, scratch_operands = 0 : i64, tpu.core_type = #tpu.core_type<tc>, window_params = [{transform_indices = @transform_0, window_bounds = array<i64: 64, 128>}, {pipeline_mode = #tpu.pipeline_mode<synchronous>, transform_indices = @transform_1, window_bounds = array<i64: 8, 128>}, {pipeline_mode = #tpu.pipeline_mode<synchronous>, transform_indices = @transform_2, window_bounds = array<i64: 8, 128>}, {pipeline_mode = #tpu.pipeline_mode<synchronous>, transform_indices = @transform_3, window_bounds = array<i64: 128, 512>}, {pipeline_mode = #tpu.pipeline_mode<synchronous>, transform_indices = @transform_4, window_bounds = array<i64: 128, 512>}, {pipeline_mode = #tpu.pipeline_mode<synchronous>, transform_indices = @transform_5, window_bounds = array<i64: 1, 512>}, {transform_indices = @transform_6, window_bounds = array<i64: 64, 128>}, {pipeline_mode = #tpu.pipeline_mode<synchronous>, transform_indices = @transform_7, window_bounds = array<i64: 8, 128>}, {pipeline_mode = #tpu.pipeline_mode<synchronous>, transform_indices = @transform_8, window_bounds = array<i64: 8, 128>}]} {
    %c0_i32 = arith.constant 0 : i32
    %0 = arith.cmpi eq, %arg0, %c0_i32 : i32
    %1 = arith.extui %0 : i1 to i32
    %c0_i32_0 = arith.constant 0 : i32
    %2 = arith.cmpi ne, %1, %c0_i32_0 : i32
    scf.if %2 {
      %c0_119 = arith.constant 0 : index
      %c0_120 = arith.constant 0 : index
      %317 = vector.load %arg2[%c0_119, %c0_120] : memref<8x128xf32, #tpu.memory_space<vmem>>, vector<8x128xf32>
      %c0_121 = arith.constant 0 : index
      %c0_122 = arith.constant 0 : index
      %318 = vector.load %arg8[%c0_121, %c0_122] : memref<8x128xf32, #tpu.memory_space<vmem>>, vector<8x128xf32>
      tpu.vector_store %arg8[%c0_121, %c0_122], %317 {strides = array<i32>} : memref<8x128xf32, #tpu.memory_space<vmem>>, vector<8x128xf32>,
      %c0_123 = arith.constant 0 : index
      %c0_124 = arith.constant 0 : index
      %319 = vector.load %arg3[%c0_123, %c0_124] : memref<8x128xf32, #tpu.memory_space<vmem>>, vector<8x128xf32>
      %c0_125 = arith.constant 0 : index
      %c0_126 = arith.constant 0 : index
      %320 = vector.load %arg9[%c0_125, %c0_126] : memref<8x128xf32, #tpu.memory_space<vmem>>, vector<8x128xf32>
      tpu.vector_store %arg9[%c0_125, %c0_126], %319 {strides = array<i32>} : memref<8x128xf32, #tpu.memory_space<vmem>>, vector<8x128xf32>,
    } else {
    }
    %c0 = arith.constant 0 : index
    %c0_1 = arith.constant 0 : index
    %3 = vector.load %arg1[%c0, %c0_1] : memref<64x128xbf16, #tpu.memory_space<vmem>>, vector<64x128xbf16>
    %c0_2 = arith.constant 0 : index
    %c0_3 = arith.constant 0 : index
    %4 = vector.load %arg4[%c0_2, %c0_3] : memref<128x512xbf16, #tpu.memory_space<vmem>>, vector<128x512xbf16>
    %cst = arith.constant dense<0.000000e+00> : vector<64x512xf32>
    %5 = tpu.matmul %3, %4, %cst {dimension_numbers = #tpu.dot_dimension_numbers<[1], [0], [0], [1], [0, 0, 1, 1], [], []>} : vector<64x128xbf16>, vector<128x512xbf16>, vector<64x512xf32> -> vector<64x512xf32>
    %c0_4 = arith.constant 0 : index
    %c0_5 = arith.constant 0 : index
    %6 = vector.load %arg6[%c0_4, %c0_5] : memref<1x512xf32, #tpu.memory_space<vmem>>, vector<1x512xf32>
    %7 = vector.broadcast %6 : vector<1x512xf32> to vector<64x512xf32>
    %8 = arith.addf %5, %7 : vector<64x512xf32>
    %c0_6 = arith.constant 0 : index
    %c0_7 = arith.constant 0 : index
    %9 = vector.load %arg8[%c0_6, %c0_7] : memref<8x128xf32, #tpu.memory_space<vmem>>, vector<8x128xf32>
    %c0_8 = arith.constant 0 : index
    %c0_9 = arith.constant 0 : index
    %10 = vector.load %arg9[%c0_8, %c0_9] : memref<8x128xf32, #tpu.memory_space<vmem>>, vector<8x128xf32>
    %11 = vector.extract_strided_slice %8 {offsets = [0, 0], sizes = [8, 512], strides = [1, 1]} : vector<64x512xf32> to vector<8x512xf32>
    %12 = arith.truncf %9 : vector<8x128xf32> to vector<8x128xbf16>
    %c0_10 = arith.constant 0 : index
    %c0_11 = arith.constant 0 : index
    %13 = vector.load %arg5[%c0_10, %c0_11] : memref<128x512xbf16, #tpu.memory_space<vmem>>, vector<128x512xbf16>
    %cst_12 = arith.constant dense<0.000000e+00> : vector<8x512xf32>
    %14 = tpu.matmul %12, %13, %cst_12 {dimension_numbers = #tpu.dot_dimension_numbers<[1], [0], [0], [1], [0, 0, 1, 1], [], []>} : vector<8x128xbf16>, vector<128x512xbf16>, vector<8x512xf32> -> vector<8x512xf32>
    %15 = arith.addf %11, %14 : vector<8x512xf32>
    %16 = vector.extract_strided_slice %15 {offsets = [0, 0], sizes = [8, 128], strides = [1, 1]} : vector<8x512xf32> to vector<8x128xf32>
    %cst_13 = arith.constant 5.000000e-01 : f32
    %17 = vector.broadcast %cst_13 : f32 to vector<8x128xf32>
    %18 = arith.mulf %17, %16 : vector<8x128xf32>
    %19 = math.tanh %18 : vector<8x128xf32>
    %cst_14 = arith.constant 5.000000e-01 : f32
    %20 = vector.broadcast %cst_14 : f32 to vector<8x128xf32>
    %21 = arith.mulf %20, %19 : vector<8x128xf32>
    %cst_15 = arith.constant 5.000000e-01 : f32
    %22 = vector.broadcast %cst_15 : f32 to vector<8x128xf32>
    %23 = arith.addf %21, %22 : vector<8x128xf32>
    %24 = vector.extract_strided_slice %15 {offsets = [0, 128], sizes = [8, 128], strides = [1, 1]} : vector<8x512xf32> to vector<8x128xf32>
    %cst_16 = arith.constant 5.000000e-01 : f32
    %25 = vector.broadcast %cst_16 : f32 to vector<8x128xf32>
    %26 = arith.mulf %25, %24 : vector<8x128xf32>
    %27 = math.tanh %26 : vector<8x128xf32>
    %cst_17 = arith.constant 5.000000e-01 : f32
    %28 = vector.broadcast %cst_17 : f32 to vector<8x128xf32>
    %29 = arith.mulf %28, %27 : vector<8x128xf32>
    %cst_18 = arith.constant 5.000000e-01 : f32
    %30 = vector.broadcast %cst_18 : f32 to vector<8x128xf32>
    %31 = arith.addf %29, %30 : vector<8x128xf32>
    %32 = vector.extract_strided_slice %15 {offsets = [0, 256], sizes = [8, 128], strides = [1, 1]} : vector<8x512xf32> to vector<8x128xf32>
    %33 = math.tanh %32 : vector<8x128xf32>
    %34 = vector.extract_strided_slice %15 {offsets = [0, 384], sizes = [8, 128], strides = [1, 1]} : vector<8x512xf32> to vector<8x128xf32>
    %cst_19 = arith.constant 5.000000e-01 : f32
    %35 = vector.broadcast %cst_19 : f32 to vector<8x128xf32>
    %36 = arith.mulf %35, %34 : vector<8x128xf32>
    %37 = math.tanh %36 : vector<8x128xf32>
    %cst_20 = arith.constant 5.000000e-01 : f32
    %38 = vector.broadcast %cst_20 : f32 to vector<8x128xf32>
    %39 = arith.mulf %38, %37 : vector<8x128xf32>
    %cst_21 = arith.constant 5.000000e-01 : f32
    %40 = vector.broadcast %cst_21 : f32 to vector<8x128xf32>
    %41 = arith.addf %39, %40 : vector<8x128xf32>
    %42 = arith.mulf %31, %10 : vector<8x128xf32>
    %43 = arith.mulf %23, %33 : vector<8x128xf32>
    %44 = arith.addf %42, %43 : vector<8x128xf32>
    %45 = math.tanh %44 : vector<8x128xf32>
    %46 = arith.mulf %41, %45 : vector<8x128xf32>
    %47 = arith.truncf %46 : vector<8x128xf32> to vector<8x128xbf16>
    %c0_22 = arith.constant 0 : index
    %c0_23 = arith.constant 0 : index
    %48 = vector.load %arg7[%c0_22, %c0_23] : memref<64x128xbf16, #tpu.memory_space<vmem>>, vector<8x128xbf16>
    tpu.vector_store %arg7[%c0_22, %c0_23], %47 {strides = array<i32>} : memref<64x128xbf16, #tpu.memory_space<vmem>>, vector<8x128xbf16>,
    %49 = vector.extract_strided_slice %8 {offsets = [8, 0], sizes = [8, 512], strides = [1, 1]} : vector<64x512xf32> to vector<8x512xf32>
    %50 = arith.truncf %46 : vector<8x128xf32> to vector<8x128xbf16>
    %c0_24 = arith.constant 0 : index
    %c0_25 = arith.constant 0 : index
    %51 = vector.load %arg5[%c0_24, %c0_25] : memref<128x512xbf16, #tpu.memory_space<vmem>>, vector<128x512xbf16>
    %cst_26 = arith.constant dense<0.000000e+00> : vector<8x512xf32>
    %52 = tpu.matmul %50, %51, %cst_26 {dimension_numbers = #tpu.dot_dimension_numbers<[1], [0], [0], [1], [0, 0, 1, 1], [], []>} : vector<8x128xbf16>, vector<128x512xbf16>, vector<8x512xf32> -> vector<8x512xf32>
    %53 = arith.addf %49, %52 : vector<8x512xf32>
    %54 = vector.extract_strided_slice %53 {offsets = [0, 0], sizes = [8, 128], strides = [1, 1]} : vector<8x512xf32> to vector<8x128xf32>
    %cst_27 = arith.constant 5.000000e-01 : f32
    %55 = vector.broadcast %cst_27 : f32 to vector<8x128xf32>
    %56 = arith.mulf %55, %54 : vector<8x128xf32>
    %57 = math.tanh %56 : vector<8x128xf32>
    %cst_28 = arith.constant 5.000000e-01 : f32
    %58 = vector.broadcast %cst_28 : f32 to vector<8x128xf32>
    %59 = arith.mulf %58, %57 : vector<8x128xf32>
    %cst_29 = arith.constant 5.000000e-01 : f32
    %60 = vector.broadcast %cst_29 : f32 to vector<8x128xf32>
    %61 = arith.addf %59, %60 : vector<8x128xf32>
    %62 = vector.extract_strided_slice %53 {offsets = [0, 128], sizes = [8, 128], strides = [1, 1]} : vector<8x512xf32> to vector<8x128xf32>
    %cst_30 = arith.constant 5.000000e-01 : f32
    %63 = vector.broadcast %cst_30 : f32 to vector<8x128xf32>
    %64 = arith.mulf %63, %62 : vector<8x128xf32>
    %65 = math.tanh %64 : vector<8x128xf32>
    %cst_31 = arith.constant 5.000000e-01 : f32
    %66 = vector.broadcast %cst_31 : f32 to vector<8x128xf32>
    %67 = arith.mulf %66, %65 : vector<8x128xf32>
    %cst_32 = arith.constant 5.000000e-01 : f32
    %68 = vector.broadcast %cst_32 : f32 to vector<8x128xf32>
    %69 = arith.addf %67, %68 : vector<8x128xf32>
    %70 = vector.extract_strided_slice %53 {offsets = [0, 256], sizes = [8, 128], strides = [1, 1]} : vector<8x512xf32> to vector<8x128xf32>
    %71 = math.tanh %70 : vector<8x128xf32>
    %72 = vector.extract_strided_slice %53 {offsets = [0, 384], sizes = [8, 128], strides = [1, 1]} : vector<8x512xf32> to vector<8x128xf32>
    %cst_33 = arith.constant 5.000000e-01 : f32
    %73 = vector.broadcast %cst_33 : f32 to vector<8x128xf32>
    %74 = arith.mulf %73, %72 : vector<8x128xf32>
    %75 = math.tanh %74 : vector<8x128xf32>
    %cst_34 = arith.constant 5.000000e-01 : f32
    %76 = vector.broadcast %cst_34 : f32 to vector<8x128xf32>
    %77 = arith.mulf %76, %75 : vector<8x128xf32>
    %cst_35 = arith.constant 5.000000e-01 : f32
    %78 = vector.broadcast %cst_35 : f32 to vector<8x128xf32>
    %79 = arith.addf %77, %78 : vector<8x128xf32>
    %80 = arith.mulf %69, %44 : vector<8x128xf32>
    %81 = arith.mulf %61, %71 : vector<8x128xf32>
    %82 = arith.addf %80, %81 : vector<8x128xf32>
    %83 = math.tanh %82 : vector<8x128xf32>
    %84 = arith.mulf %79, %83 : vector<8x128xf32>
    %85 = arith.truncf %84 : vector<8x128xf32> to vector<8x128xbf16>
    %c8 = arith.constant 8 : index
    %c0_36 = arith.constant 0 : index
    %86 = vector.load %arg7[%c8, %c0_36] : memref<64x128xbf16, #tpu.memory_space<vmem>>, vector<8x128xbf16>
    tpu.vector_store %arg7[%c8, %c0_36], %85 {strides = array<i32>} : memref<64x128xbf16, #tpu.memory_space<vmem>>, vector<8x128xbf16>,
    %87 = vector.extract_strided_slice %8 {offsets = [16, 0], sizes = [8, 512], strides = [1, 1]} : vector<64x512xf32> to vector<8x512xf32>
    %88 = arith.truncf %84 : vector<8x128xf32> to vector<8x128xbf16>
    %c0_37 = arith.constant 0 : index
    %c0_38 = arith.constant 0 : index
    %89 = vector.load %arg5[%c0_37, %c0_38] : memref<128x512xbf16, #tpu.memory_space<vmem>>, vector<128x512xbf16>
    %cst_39 = arith.constant dense<0.000000e+00> : vector<8x512xf32>
    %90 = tpu.matmul %88, %89, %cst_39 {dimension_numbers = #tpu.dot_dimension_numbers<[1], [0], [0], [1], [0, 0, 1, 1], [], []>} : vector<8x128xbf16>, vector<128x512xbf16>, vector<8x512xf32> -> vector<8x512xf32>
    %91 = arith.addf %87, %90 : vector<8x512xf32>
    %92 = vector.extract_strided_slice %91 {offsets = [0, 0], sizes = [8, 128], strides = [1, 1]} : vector<8x512xf32> to vector<8x128xf32>
    %cst_40 = arith.constant 5.000000e-01 : f32
    %93 = vector.broadcast %cst_40 : f32 to vector<8x128xf32>
    %94 = arith.mulf %93, %92 : vector<8x128xf32>
    %95 = math.tanh %94 : vector<8x128xf32>
    %cst_41 = arith.constant 5.000000e-01 : f32
    %96 = vector.broadcast %cst_41 : f32 to vector<8x128xf32>
    %97 = arith.mulf %96, %95 : vector<8x128xf32>
    %cst_42 = arith.constant 5.000000e-01 : f32
    %98 = vector.broadcast %cst_42 : f32 to vector<8x128xf32>
    %99 = arith.addf %97, %98 : vector<8x128xf32>
    %100 = vector.extract_strided_slice %91 {offsets = [0, 128], sizes = [8, 128], strides = [1, 1]} : vector<8x512xf32> to vector<8x128xf32>
    %cst_43 = arith.constant 5.000000e-01 : f32
    %101 = vector.broadcast %cst_43 : f32 to vector<8x128xf32>
    %102 = arith.mulf %101, %100 : vector<8x128xf32>
    %103 = math.tanh %102 : vector<8x128xf32>
    %cst_44 = arith.constant 5.000000e-01 : f32
    %104 = vector.broadcast %cst_44 : f32 to vector<8x128xf32>
    %105 = arith.mulf %104, %103 : vector<8x128xf32>
    %cst_45 = arith.constant 5.000000e-01 : f32
    %106 = vector.broadcast %cst_45 : f32 to vector<8x128xf32>
    %107 = arith.addf %105, %106 : vector<8x128xf32>
    %108 = vector.extract_strided_slice %91 {offsets = [0, 256], sizes = [8, 128], strides = [1, 1]} : vector<8x512xf32> to vector<8x128xf32>
    %109 = math.tanh %108 : vector<8x128xf32>
    %110 = vector.extract_strided_slice %91 {offsets = [0, 384], sizes = [8, 128], strides = [1, 1]} : vector<8x512xf32> to vector<8x128xf32>
    %cst_46 = arith.constant 5.000000e-01 : f32
    %111 = vector.broadcast %cst_46 : f32 to vector<8x128xf32>
    %112 = arith.mulf %111, %110 : vector<8x128xf32>
    %113 = math.tanh %112 : vector<8x128xf32>
    %cst_47 = arith.constant 5.000000e-01 : f32
    %114 = vector.broadcast %cst_47 : f32 to vector<8x128xf32>
    %115 = arith.mulf %114, %113 : vector<8x128xf32>
    %cst_48 = arith.constant 5.000000e-01 : f32
    %116 = vector.broadcast %cst_48 : f32 to vector<8x128xf32>
    %117 = arith.addf %115, %116 : vector<8x128xf32>
    %118 = arith.mulf %107, %82 : vector<8x128xf32>
    %119 = arith.mulf %99, %109 : vector<8x128xf32>
    %120 = arith.addf %118, %119 : vector<8x128xf32>
    %121 = math.tanh %120 : vector<8x128xf32>
    %122 = arith.mulf %117, %121 : vector<8x128xf32>
    %123 = arith.truncf %122 : vector<8x128xf32> to vector<8x128xbf16>
    %c16 = arith.constant 16 : index
    %c0_49 = arith.constant 0 : index
    %124 = vector.load %arg7[%c16, %c0_49] : memref<64x128xbf16, #tpu.memory_space<vmem>>, vector<8x128xbf16>
    tpu.vector_store %arg7[%c16, %c0_49], %123 {strides = array<i32>} : memref<64x128xbf16, #tpu.memory_space<vmem>>, vector<8x128xbf16>,
    %125 = vector.extract_strided_slice %8 {offsets = [24, 0], sizes = [8, 512], strides = [1, 1]} : vector<64x512xf32> to vector<8x512xf32>
    %126 = arith.truncf %122 : vector<8x128xf32> to vector<8x128xbf16>
    %c0_50 = arith.constant 0 : index
    %c0_51 = arith.constant 0 : index
    %127 = vector.load %arg5[%c0_50, %c0_51] : memref<128x512xbf16, #tpu.memory_space<vmem>>, vector<128x512xbf16>
    %cst_52 = arith.constant dense<0.000000e+00> : vector<8x512xf32>
    %128 = tpu.matmul %126, %127, %cst_52 {dimension_numbers = #tpu.dot_dimension_numbers<[1], [0], [0], [1], [0, 0, 1, 1], [], []>} : vector<8x128xbf16>, vector<128x512xbf16>, vector<8x512xf32> -> vector<8x512xf32>
    %129 = arith.addf %125, %128 : vector<8x512xf32>
    %130 = vector.extract_strided_slice %129 {offsets = [0, 0], sizes = [8, 128], strides = [1, 1]} : vector<8x512xf32> to vector<8x128xf32>
    %cst_53 = arith.constant 5.000000e-01 : f32
    %131 = vector.broadcast %cst_53 : f32 to vector<8x128xf32>
    %132 = arith.mulf %131, %130 : vector<8x128xf32>
    %133 = math.tanh %132 : vector<8x128xf32>
    %cst_54 = arith.constant 5.000000e-01 : f32
    %134 = vector.broadcast %cst_54 : f32 to vector<8x128xf32>
    %135 = arith.mulf %134, %133 : vector<8x128xf32>
    %cst_55 = arith.constant 5.000000e-01 : f32
    %136 = vector.broadcast %cst_55 : f32 to vector<8x128xf32>
    %137 = arith.addf %135, %136 : vector<8x128xf32>
    %138 = vector.extract_strided_slice %129 {offsets = [0, 128], sizes = [8, 128], strides = [1, 1]} : vector<8x512xf32> to vector<8x128xf32>
    %cst_56 = arith.constant 5.000000e-01 : f32
    %139 = vector.broadcast %cst_56 : f32 to vector<8x128xf32>
    %140 = arith.mulf %139, %138 : vector<8x128xf32>
    %141 = math.tanh %140 : vector<8x128xf32>
    %cst_57 = arith.constant 5.000000e-01 : f32
    %142 = vector.broadcast %cst_57 : f32 to vector<8x128xf32>
    %143 = arith.mulf %142, %141 : vector<8x128xf32>
    %cst_58 = arith.constant 5.000000e-01 : f32
    %144 = vector.broadcast %cst_58 : f32 to vector<8x128xf32>
    %145 = arith.addf %143, %144 : vector<8x128xf32>
    %146 = vector.extract_strided_slice %129 {offsets = [0, 256], sizes = [8, 128], strides = [1, 1]} : vector<8x512xf32> to vector<8x128xf32>
    %147 = math.tanh %146 : vector<8x128xf32>
    %148 = vector.extract_strided_slice %129 {offsets = [0, 384], sizes = [8, 128], strides = [1, 1]} : vector<8x512xf32> to vector<8x128xf32>
    %cst_59 = arith.constant 5.000000e-01 : f32
    %149 = vector.broadcast %cst_59 : f32 to vector<8x128xf32>
    %150 = arith.mulf %149, %148 : vector<8x128xf32>
    %151 = math.tanh %150 : vector<8x128xf32>
    %cst_60 = arith.constant 5.000000e-01 : f32
    %152 = vector.broadcast %cst_60 : f32 to vector<8x128xf32>
    %153 = arith.mulf %152, %151 : vector<8x128xf32>
    %cst_61 = arith.constant 5.000000e-01 : f32
    %154 = vector.broadcast %cst_61 : f32 to vector<8x128xf32>
    %155 = arith.addf %153, %154 : vector<8x128xf32>
    %156 = arith.mulf %145, %120 : vector<8x128xf32>
    %157 = arith.mulf %137, %147 : vector<8x128xf32>
    %158 = arith.addf %156, %157 : vector<8x128xf32>
    %159 = math.tanh %158 : vector<8x128xf32>
    %160 = arith.mulf %155, %159 : vector<8x128xf32>
    %161 = arith.truncf %160 : vector<8x128xf32> to vector<8x128xbf16>
    %c24 = arith.constant 24 : index
    %c0_62 = arith.constant 0 : index
    %162 = vector.load %arg7[%c24, %c0_62] : memref<64x128xbf16, #tpu.memory_space<vmem>>, vector<8x128xbf16>
    tpu.vector_store %arg7[%c24, %c0_62], %161 {strides = array<i32>} : memref<64x128xbf16, #tpu.memory_space<vmem>>, vector<8x128xbf16>,
    %163 = vector.extract_strided_slice %8 {offsets = [32, 0], sizes = [8, 512], strides = [1, 1]} : vector<64x512xf32> to vector<8x512xf32>
    %164 = arith.truncf %160 : vector<8x128xf32> to vector<8x128xbf16>
    %c0_63 = arith.constant 0 : index
    %c0_64 = arith.constant 0 : index
    %165 = vector.load %arg5[%c0_63, %c0_64] : memref<128x512xbf16, #tpu.memory_space<vmem>>, vector<128x512xbf16>
    %cst_65 = arith.constant dense<0.000000e+00> : vector<8x512xf32>
    %166 = tpu.matmul %164, %165, %cst_65 {dimension_numbers = #tpu.dot_dimension_numbers<[1], [0], [0], [1], [0, 0, 1, 1], [], []>} : vector<8x128xbf16>, vector<128x512xbf16>, vector<8x512xf32> -> vector<8x512xf32>
    %167 = arith.addf %163, %166 : vector<8x512xf32>
    %168 = vector.extract_strided_slice %167 {offsets = [0, 0], sizes = [8, 128], strides = [1, 1]} : vector<8x512xf32> to vector<8x128xf32>
    %cst_66 = arith.constant 5.000000e-01 : f32
    %169 = vector.broadcast %cst_66 : f32 to vector<8x128xf32>
    %170 = arith.mulf %169, %168 : vector<8x128xf32>
    %171 = math.tanh %170 : vector<8x128xf32>
    %cst_67 = arith.constant 5.000000e-01 : f32
    %172 = vector.broadcast %cst_67 : f32 to vector<8x128xf32>
    %173 = arith.mulf %172, %171 : vector<8x128xf32>
    %cst_68 = arith.constant 5.000000e-01 : f32
    %174 = vector.broadcast %cst_68 : f32 to vector<8x128xf32>
    %175 = arith.addf %173, %174 : vector<8x128xf32>
    %176 = vector.extract_strided_slice %167 {offsets = [0, 128], sizes = [8, 128], strides = [1, 1]} : vector<8x512xf32> to vector<8x128xf32>
    %cst_69 = arith.constant 5.000000e-01 : f32
    %177 = vector.broadcast %cst_69 : f32 to vector<8x128xf32>
    %178 = arith.mulf %177, %176 : vector<8x128xf32>
    %179 = math.tanh %178 : vector<8x128xf32>
    %cst_70 = arith.constant 5.000000e-01 : f32
    %180 = vector.broadcast %cst_70 : f32 to vector<8x128xf32>
    %181 = arith.mulf %180, %179 : vector<8x128xf32>
    %cst_71 = arith.constant 5.000000e-01 : f32
    %182 = vector.broadcast %cst_71 : f32 to vector<8x128xf32>
    %183 = arith.addf %181, %182 : vector<8x128xf32>
    %184 = vector.extract_strided_slice %167 {offsets = [0, 256], sizes = [8, 128], strides = [1, 1]} : vector<8x512xf32> to vector<8x128xf32>
    %185 = math.tanh %184 : vector<8x128xf32>
    %186 = vector.extract_strided_slice %167 {offsets = [0, 384], sizes = [8, 128], strides = [1, 1]} : vector<8x512xf32> to vector<8x128xf32>
    %cst_72 = arith.constant 5.000000e-01 : f32
    %187 = vector.broadcast %cst_72 : f32 to vector<8x128xf32>
    %188 = arith.mulf %187, %186 : vector<8x128xf32>
    %189 = math.tanh %188 : vector<8x128xf32>
    %cst_73 = arith.constant 5.000000e-01 : f32
    %190 = vector.broadcast %cst_73 : f32 to vector<8x128xf32>
    %191 = arith.mulf %190, %189 : vector<8x128xf32>
    %cst_74 = arith.constant 5.000000e-01 : f32
    %192 = vector.broadcast %cst_74 : f32 to vector<8x128xf32>
    %193 = arith.addf %191, %192 : vector<8x128xf32>
    %194 = arith.mulf %183, %158 : vector<8x128xf32>
    %195 = arith.mulf %175, %185 : vector<8x128xf32>
    %196 = arith.addf %194, %195 : vector<8x128xf32>
    %197 = math.tanh %196 : vector<8x128xf32>
    %198 = arith.mulf %193, %197 : vector<8x128xf32>
    %199 = arith.truncf %198 : vector<8x128xf32> to vector<8x128xbf16>
    %c32 = arith.constant 32 : index
    %c0_75 = arith.constant 0 : index
    %200 = vector.load %arg7[%c32, %c0_75] : memref<64x128xbf16, #tpu.memory_space<vmem>>, vector<8x128xbf16>
    tpu.vector_store %arg7[%c32, %c0_75], %199 {strides = array<i32>} : memref<64x128xbf16, #tpu.memory_space<vmem>>, vector<8x128xbf16>,
    %201 = vector.extract_strided_slice %8 {offsets = [40, 0], sizes = [8, 512], strides = [1, 1]} : vector<64x512xf32> to vector<8x512xf32>
    %202 = arith.truncf %198 : vector<8x128xf32> to vector<8x128xbf16>
    %c0_76 = arith.constant 0 : index
    %c0_77 = arith.constant 0 : index
    %203 = vector.load %arg5[%c0_76, %c0_77] : memref<128x512xbf16, #tpu.memory_space<vmem>>, vector<128x512xbf16>
    %cst_78 = arith.constant dense<0.000000e+00> : vector<8x512xf32>
    %204 = tpu.matmul %202, %203, %cst_78 {dimension_numbers = #tpu.dot_dimension_numbers<[1], [0], [0], [1], [0, 0, 1, 1], [], []>} : vector<8x128xbf16>, vector<128x512xbf16>, vector<8x512xf32> -> vector<8x512xf32>
    %205 = arith.addf %201, %204 : vector<8x512xf32>
    %206 = vector.extract_strided_slice %205 {offsets = [0, 0], sizes = [8, 128], strides = [1, 1]} : vector<8x512xf32> to vector<8x128xf32>
    %cst_79 = arith.constant 5.000000e-01 : f32
    %207 = vector.broadcast %cst_79 : f32 to vector<8x128xf32>
    %208 = arith.mulf %207, %206 : vector<8x128xf32>
    %209 = math.tanh %208 : vector<8x128xf32>
    %cst_80 = arith.constant 5.000000e-01 : f32
    %210 = vector.broadcast %cst_80 : f32 to vector<8x128xf32>
    %211 = arith.mulf %210, %209 : vector<8x128xf32>
    %cst_81 = arith.constant 5.000000e-01 : f32
    %212 = vector.broadcast %cst_81 : f32 to vector<8x128xf32>
    %213 = arith.addf %211, %212 : vector<8x128xf32>
    %214 = vector.extract_strided_slice %205 {offsets = [0, 128], sizes = [8, 128], strides = [1, 1]} : vector<8x512xf32> to vector<8x128xf32>
    %cst_82 = arith.constant 5.000000e-01 : f32
    %215 = vector.broadcast %cst_82 : f32 to vector<8x128xf32>
    %216 = arith.mulf %215, %214 : vector<8x128xf32>
    %217 = math.tanh %216 : vector<8x128xf32>
    %cst_83 = arith.constant 5.000000e-01 : f32
    %218 = vector.broadcast %cst_83 : f32 to vector<8x128xf32>
    %219 = arith.mulf %218, %217 : vector<8x128xf32>
    %cst_84 = arith.constant 5.000000e-01 : f32
    %220 = vector.broadcast %cst_84 : f32 to vector<8x128xf32>
    %221 = arith.addf %219, %220 : vector<8x128xf32>
    %222 = vector.extract_strided_slice %205 {offsets = [0, 256], sizes = [8, 128], strides = [1, 1]} : vector<8x512xf32> to vector<8x128xf32>
    %223 = math.tanh %222 : vector<8x128xf32>
    %224 = vector.extract_strided_slice %205 {offsets = [0, 384], sizes = [8, 128], strides = [1, 1]} : vector<8x512xf32> to vector<8x128xf32>
    %cst_85 = arith.constant 5.000000e-01 : f32
    %225 = vector.broadcast %cst_85 : f32 to vector<8x128xf32>
    %226 = arith.mulf %225, %224 : vector<8x128xf32>
    %227 = math.tanh %226 : vector<8x128xf32>
    %cst_86 = arith.constant 5.000000e-01 : f32
    %228 = vector.broadcast %cst_86 : f32 to vector<8x128xf32>
    %229 = arith.mulf %228, %227 : vector<8x128xf32>
    %cst_87 = arith.constant 5.000000e-01 : f32
    %230 = vector.broadcast %cst_87 : f32 to vector<8x128xf32>
    %231 = arith.addf %229, %230 : vector<8x128xf32>
    %232 = arith.mulf %221, %196 : vector<8x128xf32>
    %233 = arith.mulf %213, %223 : vector<8x128xf32>
    %234 = arith.addf %232, %233 : vector<8x128xf32>
    %235 = math.tanh %234 : vector<8x128xf32>
    %236 = arith.mulf %231, %235 : vector<8x128xf32>
    %237 = arith.truncf %236 : vector<8x128xf32> to vector<8x128xbf16>
    %c40 = arith.constant 40 : index
    %c0_88 = arith.constant 0 : index
    %238 = vector.load %arg7[%c40, %c0_88] : memref<64x128xbf16, #tpu.memory_space<vmem>>, vector<8x128xbf16>
    tpu.vector_store %arg7[%c40, %c0_88], %237 {strides = array<i32>} : memref<64x128xbf16, #tpu.memory_space<vmem>>, vector<8x128xbf16>,
    %239 = vector.extract_strided_slice %8 {offsets = [48, 0], sizes = [8, 512], strides = [1, 1]} : vector<64x512xf32> to vector<8x512xf32>
    %240 = arith.truncf %236 : vector<8x128xf32> to vector<8x128xbf16>
    %c0_89 = arith.constant 0 : index
    %c0_90 = arith.constant 0 : index
    %241 = vector.load %arg5[%c0_89, %c0_90] : memref<128x512xbf16, #tpu.memory_space<vmem>>, vector<128x512xbf16>
    %cst_91 = arith.constant dense<0.000000e+00> : vector<8x512xf32>
    %242 = tpu.matmul %240, %241, %cst_91 {dimension_numbers = #tpu.dot_dimension_numbers<[1], [0], [0], [1], [0, 0, 1, 1], [], []>} : vector<8x128xbf16>, vector<128x512xbf16>, vector<8x512xf32> -> vector<8x512xf32>
    %243 = arith.addf %239, %242 : vector<8x512xf32>
    %244 = vector.extract_strided_slice %243 {offsets = [0, 0], sizes = [8, 128], strides = [1, 1]} : vector<8x512xf32> to vector<8x128xf32>
    %cst_92 = arith.constant 5.000000e-01 : f32
    %245 = vector.broadcast %cst_92 : f32 to vector<8x128xf32>
    %246 = arith.mulf %245, %244 : vector<8x128xf32>
    %247 = math.tanh %246 : vector<8x128xf32>
    %cst_93 = arith.constant 5.000000e-01 : f32
    %248 = vector.broadcast %cst_93 : f32 to vector<8x128xf32>
    %249 = arith.mulf %248, %247 : vector<8x128xf32>
    %cst_94 = arith.constant 5.000000e-01 : f32
    %250 = vector.broadcast %cst_94 : f32 to vector<8x128xf32>
    %251 = arith.addf %249, %250 : vector<8x128xf32>
    %252 = vector.extract_strided_slice %243 {offsets = [0, 128], sizes = [8, 128], strides = [1, 1]} : vector<8x512xf32> to vector<8x128xf32>
    %cst_95 = arith.constant 5.000000e-01 : f32
    %253 = vector.broadcast %cst_95 : f32 to vector<8x128xf32>
    %254 = arith.mulf %253, %252 : vector<8x128xf32>
    %255 = math.tanh %254 : vector<8x128xf32>
    %cst_96 = arith.constant 5.000000e-01 : f32
    %256 = vector.broadcast %cst_96 : f32 to vector<8x128xf32>
    %257 = arith.mulf %256, %255 : vector<8x128xf32>
    %cst_97 = arith.constant 5.000000e-01 : f32
    %258 = vector.broadcast %cst_97 : f32 to vector<8x128xf32>
    %259 = arith.addf %257, %258 : vector<8x128xf32>
    %260 = vector.extract_strided_slice %243 {offsets = [0, 256], sizes = [8, 128], strides = [1, 1]} : vector<8x512xf32> to vector<8x128xf32>
    %261 = math.tanh %260 : vector<8x128xf32>
    %262 = vector.extract_strided_slice %243 {offsets = [0, 384], sizes = [8, 128], strides = [1, 1]} : vector<8x512xf32> to vector<8x128xf32>
    %cst_98 = arith.constant 5.000000e-01 : f32
    %263 = vector.broadcast %cst_98 : f32 to vector<8x128xf32>
    %264 = arith.mulf %263, %262 : vector<8x128xf32>
    %265 = math.tanh %264 : vector<8x128xf32>
    %cst_99 = arith.constant 5.000000e-01 : f32
    %266 = vector.broadcast %cst_99 : f32 to vector<8x128xf32>
    %267 = arith.mulf %266, %265 : vector<8x128xf32>
    %cst_100 = arith.constant 5.000000e-01 : f32
    %268 = vector.broadcast %cst_100 : f32 to vector<8x128xf32>
    %269 = arith.addf %267, %268 : vector<8x128xf32>
    %270 = arith.mulf %259, %234 : vector<8x128xf32>
    %271 = arith.mulf %251, %261 : vector<8x128xf32>
    %272 = arith.addf %270, %271 : vector<8x128xf32>
    %273 = math.tanh %272 : vector<8x128xf32>
    %274 = arith.mulf %269, %273 : vector<8x128xf32>
    %275 = arith.truncf %274 : vector<8x128xf32> to vector<8x128xbf16>
    %c48 = arith.constant 48 : index
    %c0_101 = arith.constant 0 : index
    %276 = vector.load %arg7[%c48, %c0_101] : memref<64x128xbf16, #tpu.memory_space<vmem>>, vector<8x128xbf16>
    tpu.vector_store %arg7[%c48, %c0_101], %275 {strides = array<i32>} : memref<64x128xbf16, #tpu.memory_space<vmem>>, vector<8x128xbf16>,
    %277 = vector.extract_strided_slice %8 {offsets = [56, 0], sizes = [8, 512], strides = [1, 1]} : vector<64x512xf32> to vector<8x512xf32>
    %278 = arith.truncf %274 : vector<8x128xf32> to vector<8x128xbf16>
    %c0_102 = arith.constant 0 : index
    %c0_103 = arith.constant 0 : index
    %279 = vector.load %arg5[%c0_102, %c0_103] : memref<128x512xbf16, #tpu.memory_space<vmem>>, vector<128x512xbf16>
    %cst_104 = arith.constant dense<0.000000e+00> : vector<8x512xf32>
    %280 = tpu.matmul %278, %279, %cst_104 {dimension_numbers = #tpu.dot_dimension_numbers<[1], [0], [0], [1], [0, 0, 1, 1], [], []>} : vector<8x128xbf16>, vector<128x512xbf16>, vector<8x512xf32> -> vector<8x512xf32>
    %281 = arith.addf %277, %280 : vector<8x512xf32>
    %282 = vector.extract_strided_slice %281 {offsets = [0, 0], sizes = [8, 128], strides = [1, 1]} : vector<8x512xf32> to vector<8x128xf32>
    %cst_105 = arith.constant 5.000000e-01 : f32
    %283 = vector.broadcast %cst_105 : f32 to vector<8x128xf32>
    %284 = arith.mulf %283, %282 : vector<8x128xf32>
    %285 = math.tanh %284 : vector<8x128xf32>
    %cst_106 = arith.constant 5.000000e-01 : f32
    %286 = vector.broadcast %cst_106 : f32 to vector<8x128xf32>
    %287 = arith.mulf %286, %285 : vector<8x128xf32>
    %cst_107 = arith.constant 5.000000e-01 : f32
    %288 = vector.broadcast %cst_107 : f32 to vector<8x128xf32>
    %289 = arith.addf %287, %288 : vector<8x128xf32>
    %290 = vector.extract_strided_slice %281 {offsets = [0, 128], sizes = [8, 128], strides = [1, 1]} : vector<8x512xf32> to vector<8x128xf32>
    %cst_108 = arith.constant 5.000000e-01 : f32
    %291 = vector.broadcast %cst_108 : f32 to vector<8x128xf32>
    %292 = arith.mulf %291, %290 : vector<8x128xf32>
    %293 = math.tanh %292 : vector<8x128xf32>
    %cst_109 = arith.constant 5.000000e-01 : f32
    %294 = vector.broadcast %cst_109 : f32 to vector<8x128xf32>
    %295 = arith.mulf %294, %293 : vector<8x128xf32>
    %cst_110 = arith.constant 5.000000e-01 : f32
    %296 = vector.broadcast %cst_110 : f32 to vector<8x128xf32>
    %297 = arith.addf %295, %296 : vector<8x128xf32>
    %298 = vector.extract_strided_slice %281 {offsets = [0, 256], sizes = [8, 128], strides = [1, 1]} : vector<8x512xf32> to vector<8x128xf32>
    %299 = math.tanh %298 : vector<8x128xf32>
    %300 = vector.extract_strided_slice %281 {offsets = [0, 384], sizes = [8, 128], strides = [1, 1]} : vector<8x512xf32> to vector<8x128xf32>
    %cst_111 = arith.constant 5.000000e-01 : f32
    %301 = vector.broadcast %cst_111 : f32 to vector<8x128xf32>
    %302 = arith.mulf %301, %300 : vector<8x128xf32>
    %303 = math.tanh %302 : vector<8x128xf32>
    %cst_112 = arith.constant 5.000000e-01 : f32
    %304 = vector.broadcast %cst_112 : f32 to vector<8x128xf32>
    %305 = arith.mulf %304, %303 : vector<8x128xf32>
    %cst_113 = arith.constant 5.000000e-01 : f32
    %306 = vector.broadcast %cst_113 : f32 to vector<8x128xf32>
    %307 = arith.addf %305, %306 : vector<8x128xf32>
    %308 = arith.mulf %297, %272 : vector<8x128xf32>
    %309 = arith.mulf %289, %299 : vector<8x128xf32>
    %310 = arith.addf %308, %309 : vector<8x128xf32>
    %311 = math.tanh %310 : vector<8x128xf32>
    %312 = arith.mulf %307, %311 : vector<8x128xf32>
    %313 = arith.truncf %312 : vector<8x128xf32> to vector<8x128xbf16>
    %c56 = arith.constant 56 : index
    %c0_114 = arith.constant 0 : index
    %314 = vector.load %arg7[%c56, %c0_114] : memref<64x128xbf16, #tpu.memory_space<vmem>>, vector<8x128xbf16>
    tpu.vector_store %arg7[%c56, %c0_114], %313 {strides = array<i32>} : memref<64x128xbf16, #tpu.memory_space<vmem>>, vector<8x128xbf16>,
    %c0_115 = arith.constant 0 : index
    %c0_116 = arith.constant 0 : index
    %315 = vector.load %arg8[%c0_115, %c0_116] : memref<8x128xf32, #tpu.memory_space<vmem>>, vector<8x128xf32>
    tpu.vector_store %arg8[%c0_115, %c0_116], %312 {strides = array<i32>} : memref<8x128xf32, #tpu.memory_space<vmem>>, vector<8x128xf32>,
    %c0_117 = arith.constant 0 : index
    %c0_118 = arith.constant 0 : index
    %316 = vector.load %arg9[%c0_117, %c0_118] : memref<8x128xf32, #tpu.memory_space<vmem>>, vector<8x128xf32>
    tpu.vector_store %arg9[%c0_117, %c0_118], %310 {strides = array<i32>} : memref<8x128xf32, #tpu.memory_space<vmem>>, vector<8x128xf32>,
    return
  }
  func.func @transform_0(%arg0: i32) -> (i32, i32) {
    %c0_i32 = arith.constant 0 : i32
    %c0_i32_0 = arith.constant 0 : i32
    return %arg0, %c0_i32 : i32, i32
  }
  func.func @transform_1(%arg0: i32) -> (i32, i32) {
    %c0_i32 = arith.constant 0 : i32
    %c0_i32_0 = arith.constant 0 : i32
    %c0_i32_1 = arith.constant 0 : i32
    return %c0_i32, %c0_i32_0 : i32, i32
  }
  func.func @transform_2(%arg0: i32) -> (i32, i32) {
    %c0_i32 = arith.constant 0 : i32
    %c0_i32_0 = arith.constant 0 : i32
    %c0_i32_1 = arith.constant 0 : i32
    return %c0_i32, %c0_i32_0 : i32, i32
  }
  func.func @transform_3(%arg0: i32) -> (i32, i32) {
    %c0_i32 = arith.constant 0 : i32
    %c0_i32_0 = arith.constant 0 : i32
    %c0_i32_1 = arith.constant 0 : i32
    return %c0_i32, %c0_i32_0 : i32, i32
  }
  func.func @transform_4(%arg0: i32) -> (i32, i32) {
    %c0_i32 = arith.constant 0 : i32
    %c0_i32_0 = arith.constant 0 : i32
    %c0_i32_1 = arith.constant 0 : i32
    return %c0_i32, %c0_i32_0 : i32, i32
  }
  func.func @transform_5(%arg0: i32) -> (i32, i32) {
    %c0_i32 = arith.constant 0 : i32
    %c0_i32_0 = arith.constant 0 : i32
    %c0_i32_1 = arith.constant 0 : i32
    return %c0_i32, %c0_i32_0 : i32, i32
  }
  func.func @transform_6(%arg0: i32) -> (i32, i32) {
    %c0_i32 = arith.constant 0 : i32
    %c0_i32_0 = arith.constant 0 : i32
    return %arg0, %c0_i32 : i32, i32
  }
  func.func @transform_7(%arg0: i32) -> (i32, i32) {
    %c0_i32 = arith.constant 0 : i32
    %c0_i32_0 = arith.constant 0 : i32
    %c0_i32_1 = arith.constant 0 : i32
    return %c0_i32, %c0_i32_0 : i32, i32
  }
  func.func @transform_8(%arg0: i32) -> (i32, i32) {
    %c0_i32 = arith.constant 0 : i32
    %c0_i32_0 = arith.constant 0 : i32
    %c0_i32_1 = arith.constant 0 : i32
    return %c0_i32, %c0_i32_0 : i32, i32
  }
}

</mosaic_0001>

<bundles_post_ra>
// kernel: tpu_custom_call.1
= control target key start
LH: loop header
LB: loop body
LE: loop exit
PB: predicated region body
PF: predicated region fallthrough
CT: control target
= control target key end

     0   :  { %s5106_s0 = inlined_call_operand.hbm [shape: bf16[128,128], index: 0, kind: input, shape index: {}]   ;;  %s5107_s1 = inlined_call_operand.hbm [shape: f32[8,128], index: 1, kind: input, shape index: {}]   ;;  %s5108_s2 = inlined_call_operand.hbm [shape: f32[8,128], index: 2, kind: input, shape index: {}]   ;;  %s5109_s3 = inlined_call_operand.hbm [shape: bf16[128,512], index: 3, kind: input, shape index: {}]   ;;  %s5110_s4 = inlined_call_operand.hbm [shape: bf16[128,512], index: 4, kind: input, shape index: {}]   ;;  %s5111_s5 = inlined_call_operand.vmem [shape: f32[1,512], index: 5, kind: input, shape index: {}]   ;;  %s5112_s6 = inlined_call_operand.hbm [shape: bf16[128,128], index: 6, kind: output, shape index: {0}]   ;;  %s5113_s7 = inlined_call_operand.hbm [shape: f32[8,128], index: 7, kind: output, shape index: {1}]   ;;  %s5114_s8 = inlined_call_operand.hbm [shape: f32[8,128], index: 8, kind: output, shape index: {2}]  }
   0x1   :  { %5121 = sst [smem:[#allocation39_spill]] %s5107_s1 }
   0x2   :  { %5122 = sst [smem:[#allocation40_spill]] %s5108_s2 }
   0x3   :  { %14 = vsyncpa [#allocation3], 0 }
   0x4   :  { %16 = vsyncpa [#allocation3 + $0x1], 0 }
   0x5   :  { %17 = vsyncpa [#allocation6], 0 }
   0x6   :  { %18 = vsyncpa [#allocation9], 0 }
   0x7   :  { %19 = vsyncpa [#allocation4], 0 }
   0x8   :  { %21 = vsyncpa [#allocation4 + $0x1], 0 }
   0x9   :  { %22 = vsyncpa [#allocation13], 0  ;;  %s4309_s27 = smov 0   ;;  %s4311_s28 = smov 0  }
   0xa   :  { %s4313_s29 = smov 0   ;;  %s4315_s30 = smov 0  }
   0xb LB: > { %s4330_s9 = sadd.s32 4294967295, %s4247_s30   ;;  %s3334_s10 = sadd.s32 4294967294, %s4247_s30   ;;  %s4247_s30 = sphi %s4315_s30, %s5190_s30   ;;  %s4243_s29 = sphi %s4313_s29, %s5189_s29   ;;  %s4239_s28 = sphi %s4311_s28, %s5188_s28   ;;  %s4235_s27 = sphi %s4309_s27, %s5187_s27  }
   0xc   : > { %p48_p0 = scmp.ne.s32.totalorder %s4239_s28, %s4235_s27  ;;  %p5115_p1 = scmp.eq.s32.totalorder %s4330_s9, 0 }
   0xd   : > { %p183_p3 = scmp.eq.s32.totalorder %s3334_s10, 1  ;;  %p3335_p5 = scmp.ge.s32.totalorder %s4247_s30, 1 }
   0xe   : > { %p4339_p4 = por %p5115_p1, %p48_p0  ;;  %p232_p7 = scmp.lt.s32.totalorder %s4247_s30, 3 }
   0xf   : > { %p4344_p6 = por %p183_p3, %p48_p0  ;;  %s4249_s14 = smov [#allocation5]  }
  0x10   : > { %s5123_s11 = scalar_select %p4339_p4, 1, 0 }
  0x11   : > { %s5124_s12 = scalar_select %p4344_p6, 1, 0 }
  0x12   : > { %p4350_p9 = pnand %p3335_p5, %p232_p7  ;;  %s245_s15 = sshll.u32 %s4249_s14, 4  ;;  %s246_s15 = int_to_ptr.vmem [resolvable:$true] %s245_s15 }
  0x13   : > { %s4250_s16 = smov [#allocation8]   ;;  %s4251_s19 = smov [#allocation7]  }
  0x14   : > { %s5125_s13 = scalar_select %p4350_p9, 1, 0 }
  0x15   : > { %p3683_p11 = pneg %p4350_p9  ;;  %s266_s17 = sshll.u32 %s4250_s16, 4  ;;  %s267_s17 = int_to_ptr.vmem [resolvable:$true] %s266_s17 }
  0x16   : > { %s256_s20 = sshll.u32 %s4251_s19, 4  ;;  %s4002_s21 = scalar_lea.vmem %s246_s15, 128  ;;  %s257_s20 = int_to_ptr.vmem [resolvable:$true] %s256_s20 }
  0x17   : > { %p4359_p12 = pnand %p3683_p11, %p5115_p1  ;;  %p4003_p0 = scmp.ne.s32.totalorder %s246_s15, %s4002_s21 }
  0x18   : > { %p4010_p7 = scmp.lt.s32.totalorder %s246_s15, %s246_s15  ;;  %p4011_p10 = scmp.lt.s32.totalorder %s4002_s21, %s4002_s21 }
  0x19   : > { %p3993_p13 = pneg %p4359_p12 }
  0x1a   : > { %p4012_p8 = por %p4011_p10, %p4010_p7 }
  0x1b   : > { %p4005_p3 = pnand %p4003_p0, %p3993_p13 }
  0x1d   : > { %p4006_p5 = pneg %p4005_p3 }
  0x1f   : > { %p4013_p11 = pnand %p4012_p8, %p4006_p5 }
  0x21   : > { %4016 = shalt.err (!%p4013_p11)
}
  0x22   : > { %s5127_s1 = sld [smem:[#allocation39_spill]]  ;;  %s4028_s24 = scalar_lea.vmem %s267_s17, 4096 }
  0x23   : > { %p4029_p1 = scmp.ne.s32.totalorder %s267_s17, %s4028_s24  ;;  %p4036_p0 = scmp.lt.s32.totalorder %s267_s17, %s267_s17 }
  0x24   : > { %p4037_p3 = scmp.lt.s32.totalorder %s4028_s24, %s4028_s24 }
  0x25   : > { %p4031_p2 = pnand %p4029_p1, %p3993_p13 }
  0x26   : > { %p4038_p4 = por %p4037_p3, %p4036_p0 }
  0x27   : > { %p4032_p6 = pneg %p4031_p2 }
  0x28   : > { %3686 = dma.hbm_to_vmem [thread:$0]  (!%p4359_p12), %s5127_s1, 128, %s246_s15, [#allocation6]  }
  0x29   : > { %p4039_p9 = pnand %p4038_p4, %p4032_p6 }
  0x2b   : > { %4042 = shalt.err (!%p4039_p9)
}
  0x2c   : > { %s4252_s25 = smov 256   ;;  %s4253_s26 = smov 16  }
  0x2d   : > { %3692 = dma.hbm_to_vmem [thread:$0]  (!%p4359_p12), %s5109_s3, 4096, %s267_s17, [#allocation9], %s4252_s25, %s4252_s25, %s4253_s26  }
  0x2e   : > { %s4054_s15 = scalar_lea.vmem %s257_s20, 128  ;;  %p4062_p10 = scmp.lt.s32.totalorder %s257_s20, %s257_s20 }
  0x2f   : > { %p4055_p8 = scmp.ne.s32.totalorder %s257_s20, %s4054_s15  ;;  %p4063_p5 = scmp.lt.s32.totalorder %s4054_s15, %s4054_s15 }
  0x31   : > { %p4057_p1 = pnand %p4055_p8, %p3993_p13  ;;  %p4064_p4 = por %p4063_p5, %p4062_p10 }
  0x33   : > { %p4058_p2 = pneg %p4057_p1 }
  0x35   : > { %p4065_p6 = pnand %p4064_p4, %p4058_p2 }
  0x37   : > { %4068 = shalt.err (!%p4065_p6)
}
  0x38   : > { %s5128_s2 = sld [smem:[#allocation40_spill]]  ;;  %s4254_s17 = smov [#allocation10]  }
  0x39   : > { %s279_s21 = sshll.u32 %s4254_s17, 4  ;;  %s280_s21 = int_to_ptr.vmem [resolvable:$true] %s279_s21 }
  0x3a   : > { %s4080_s22 = scalar_lea.vmem %s280_s21, 4096  ;;  %p4088_p0 = scmp.lt.s32.totalorder %s280_s21, %s280_s21 }
  0x3b   : > { %p4081_p9 = scmp.ne.s32.totalorder %s280_s21, %s4080_s22  ;;  %p4089_p3 = scmp.lt.s32.totalorder %s4080_s22, %s4080_s22 }
  0x3d   : > { %p4083_p7 = pnand %p4081_p9, %p3993_p13  ;;  %p4090_p8 = por %p4089_p3, %p4088_p0 }
  0x3e   : > { %3689 = dma.hbm_to_vmem [thread:$0]  (!%p4359_p12), %s5128_s2, 128, %s257_s20, [#allocation6]  }
  0x3f   : > { %p4084_p11 = pneg %p4083_p7 }
  0x41   : > { %p4091_p1 = pnand %p4090_p8, %p4084_p11 }
  0x43   : > { %4094 = shalt.err (!%p4091_p1)
}
  0x44   : > { %3695 = dma.hbm_to_vmem [thread:$0]  (!%p4359_p12), %s5110_s4, 4096, %s280_s21, [#allocation9], %s4252_s25, %s4252_s25, %s4253_s26  }
  0x45   : > { %s4398_s20 = sadd.s32 1, %s4247_s30   ;;  %s35_s10 = sadd.s32 1, %s4243_s29 }
  0x46   : > { %s32_s18 = ssub.s32 %s4247_s30, %s4398_s20  ;;  %p42_p13 = scmp.ne.s32.totalorder %s4243_s29, %s4239_s28 }
  0x47   : > { %p33_p2 = scmp.eq.s32.totalorder %s32_s18, 0  ;;  %p43_p10 = scmp.eq.s32.totalorder %s4247_s30, 0 }
  0x48   : > { %p5129_p5 = scmp.eq.s32.totalorder %s4330_s9, 1  ;;  %p3708_p6 = scmp.lt.s32.totalorder %s4247_s30, 2 }
  0x49   : > { %s4414_s15 = scalar_select %p33_p2, %s4243_s29, %s35_s10  }
  0x4a   : > { %p4408_p4 = por %p5129_p5, %p42_p13  ;;  %p44_p9 = por %p43_p10, %p42_p13 }
  0x4b   : > { %s296_s16 = sand.u32 1, %s4243_s29   ;;  %s3653_s25 = sshll.u32 %s4247_s30, 9 }
  0x4c   : > { %s5130_s14 = scalar_select %p4408_p4, 1, 0 }
  0x4d   : > { %s3341_s19 = sshll.u32 %s296_s16, 5  ;;  %s4421_s21 = scalar_lea.hbm %s5106_s0, %s3653_s25 }
  0x4e   : > { %s300_s22 = scalar_lea.vmem [#allocation2], %s3341_s19  ;;  %p4425_p12 = pnand %p3708_p6, %p44_p9 }
  0x4f   : > { %s307_s23 = sshll.u32 %s300_s22, 4  ;;  %s4429_s10 = scalar_lea.sflag [#allocation3], %s296_s16  ;;  %s4423_s23 = int_to_ptr.vmem [resolvable:$true] %s307_s23 }
  0x50   : > { %s4095_s18 = scalar_lea.hbm %s4421_s21, 512  ;;  %p4097_p11 = pneg %p4425_p12 }
  0x51   : > { %p4096_p7 = scmp.ne.s32.totalorder %s4421_s21, %s4095_s18  ;;  %s4100_s19 = scalar_lea.hbm %s5106_s0, 1024 }
  0x52   : > { %p4101_p8 = scmp.lt.s32.totalorder %s4421_s21, %s5106_s0  ;;  %p4102_p1 = scmp.lt.s32.totalorder %s4100_s19, %s4095_s18 }
  0x53   : > { %p4098_p0 = pnand %p4097_p11, %p4096_p7 }
  0x54   : > { %p4103_p13 = por %p4102_p1, %p4101_p8 }
  0x55   : > { %p4099_p3 = pneg %p4098_p0 }
  0x57   : > { %p4104_p2 = pnand %p4103_p13, %p4099_p3 }
  0x59   : > { %4107 = shalt.err (!%p4104_p2)
}
  0x5a   : > { %s4108_s16 = scalar_lea.vmem %s4423_s23, 512  ;;  %s4255_s1 = smov [#allocation2]  }
  0x5b   : > { %p4109_p10 = scmp.ne.s32.totalorder %s4423_s23, %s4108_s16  ;;  %s4113_s2 = sshll.u32 %s4255_s1, 4  ;;  %s4114_s2 = int_to_ptr.vmem [resolvable:$false] %s4113_s2 }
  0x5c   : > { %s4115_s25 = scalar_lea.vmem %s4114_s2, 1024  ;;  %p4116_p9 = scmp.lt.s32.totalorder %s4423_s23, %s4114_s2 }
  0x5d   : > { %p4111_p5 = pnand %p4109_p10, %p4097_p11  ;;  %p4117_p7 = scmp.lt.s32.totalorder %s4115_s25, %s4108_s16 }
  0x5f   : > { %p4112_p6 = pneg %p4111_p5  ;;  %p4118_p0 = por %p4117_p7, %p4116_p9 }
  0x61   : > { %p4119_p4 = pnand %p4118_p0, %p4112_p6 }
  0x63   : > { %4122 = shalt.err (!%p4119_p4)
}
  0x64   : > { %s4256_s18 = smov 64   ;;  %s4257_s26 = smov 4  }
  0x65   : > { %3699 = dma.hbm_to_vmem [thread:$0]  (!%p4425_p12), %s4421_s21, 512, %s4423_s23, %s4429_s10, %s4256_s18, %s4256_s18, %s4257_s26  }
  0x66   : > { %p5132_p11 = scmp.ne.s32.totalorder %s5125_s13, 0 }
  0x68   : > { %319 = sbr.rel (%p5132_p11) target bundleno = 2149 (0x865), region = 44 }
  0x6d   : > { %s4453_s1 = sand.u32 1, %s4239_s28   ;;  %p5133_p4 = scmp.ne.s32.totalorder %s5123_s11, 0 }
  0x6e   : > { %s3345_s2 = sshll.u32 %s4453_s1, 5  ;;  %s322_s19 = scalar_lea.sflag [#allocation3], %s4453_s1 }
  0x6f   : > { %s4457_s17 = scalar_lea.vmem [#allocation2], %s3345_s2 }
  0x70   : > { %4214 = dma.done.wait (%p5133_p4), %s322_s19, 512  }
  0x71   : > { %4216 = vsyncadd (%p5133_p4), %s322_s19, 4294966784  ;;  %p5134_p12 = scmp.eq.s32.totalorder %s4330_s9, 0 }
  0x73   : > { %4218 = dma.done.wait (%p5134_p12), [#allocation6], 256   ;;  %p5135_p3 = pmov %p5134_p12 }
  0x75   : > { %4220 = vsyncadd (%p5135_p3), [#allocation6], 4294967040  ;;  %p5136_p8 = pmov %p5135_p3 }
  0x76   : > { %p5137_p1 = pmov %p5135_p3 }
  0x77   : > { %4222 = dma.done.wait (%p5136_p8), [#allocation9], 8192  }
  0x78   : > { %4224 = vsyncadd (%p5137_p1), [#allocation9], 4294959104  ;;  %s4471_s13 = scalar_lea.vmem [#allocation11], %s3345_s2  ;;  %p5138_p13 = scmp.ne.s32.totalorder %s4330_s9, 0 }
  0x7a   : > { %380 = sbr.rel (%p5138_p13) target bundleno = 129 (0x81), region = 68 }
  0x7f   : > { %v381_v0 = vld [vmem:[#allocation5] sm:$0xff]  ;;  %v383_v1 = vld [vmem:[#allocation7] sm:$0xff] }
  0x80   : > { %382 = vst [vmem:[#allocation12] sm:$0xff] %v381_v0  ;;  %384 = vst [vmem:[#allocation14] sm:$0xff] %v383_v1 }
  0x81 PF: > { %v3763_v2 = vld [vmem:[#allocation8 + $0xe4] ss:$16 sps:$4 sm:$0xff]   ;;  %v3765_v3 = vld [vmem:[#allocation8 + $0xec] ss:$16 sps:$4 sm:$0xff]   ;;  %v5119_v4 = vmov 0   ;;  %s4259_s23 = smov [#allocation12]  }
  0x82   : > { %663 = vmatprep.mubr.bf16.mxu0 %v5119_v4  ;;  %736 = vmatprep.mubr.bf16.mxu1 %v5119_v4  ;;  %v3767_v5 = vld [vmem:[#allocation8 + $0xe0] ss:$16 sps:$4 sm:$0xff]   ;;  %v3768_v6 = vld [vmem:[#allocation8 + $0xe8] ss:$16 sps:$4 sm:$0xff]   ;;  %v3769_v7 = vld [vmem:[#allocation8 + $0xc4] ss:$16 sps:$4 sm:$0xff]  }
  0x83   : > { %631 = vmatprep.subr.bf16.mxu0 %v3763_v2  ;;  %704 = vmatprep.subr.bf16.mxu1 %v3765_v3  ;;  %v3771_v8 = vld [vmem:[#allocation8 + $0xcc] ss:$16 sps:$4 sm:$0xff]   ;;  %v3773_v9 = vld [vmem:[#allocation8 + $0xc0] ss:$16 sps:$4 sm:$0xff]   ;;  %v3774_v10 = vld [vmem:[#allocation8 + $0xc8] ss:$16 sps:$4 sm:$0xff]  }
  0x84   : > { %632 = vmatpush1.bf16.msra.mxu0 %v3767_v5  ;;  %705 = vmatpush1.bf16.msra.mxu1 %v3768_v6  ;;  %v3775_v11 = vld [vmem:[#allocation8 + $0xa4] ss:$16 sps:$4 sm:$0xff]   ;;  %v3777_v12 = vld [vmem:[#allocation8 + $0xac] ss:$16 sps:$4 sm:$0xff]   ;;  %v3779_v13 = vld [vmem:[#allocation8 + $0xa0] ss:$16 sps:$4 sm:$0xff]  }
  0x85   : > { %633 = vmatprep.subr.bf16.mxu0 %v3769_v7  ;;  %706 = vmatprep.subr.bf16.mxu1 %v3771_v8  ;;  %v3780_v14 = vld [vmem:[#allocation8 + $0xa8] ss:$16 sps:$4 sm:$0xff]   ;;  %v3781_v15 = vld [vmem:[#allocation8 + $0x84] ss:$16 sps:$4 sm:$0xff]   ;;  %v3783_v16 = vld [vmem:[#allocation8 + $0x8c] ss:$16 sps:$4 sm:$0xff]  }
  0x86   : > { %v3785_v17 = vld [vmem:[#allocation8 + $0x80] ss:$16 sps:$4 sm:$0xff]   ;;  %v3786_v18 = vld [vmem:[#allocation8 + $0x88] ss:$16 sps:$4 sm:$0xff]   ;;  %v3787_v19 = vld [vmem:[#allocation8 + $0x64] ss:$16 sps:$4 sm:$0xff]  }
  0x87   : > { %v3789_v20 = vld [vmem:[#allocation8 + $0x6c] ss:$16 sps:$4 sm:$0xff]   ;;  %v3791_v21 = vld [vmem:[#allocation8 + $0x60] ss:$16 sps:$4 sm:$0xff]   ;;  %v3792_v22 = vld [vmem:[#allocation8 + $0x68] ss:$16 sps:$4 sm:$0xff]  }
  0x88   : > { %634 = vmatpush1.bf16.msra.mxu0 %v3773_v9  ;;  %707 = vmatpush1.bf16.msra.mxu1 %v3774_v10  ;;  %v3793_v23 = vld [vmem:[#allocation8 + $0x44] ss:$16 sps:$4 sm:$0xff]   ;;  %v3795_v24 = vld [vmem:[#allocation8 + $0x4c] ss:$16 sps:$4 sm:$0xff]   ;;  %v3797_v25 = vld [vmem:[#allocation8 + $0x40] ss:$16 sps:$4 sm:$0xff]   ;;  %v427_v10 = vlaneseq }
  0x89   : > { %635 = vmatprep.subr.bf16.mxu0 %v3775_v11  ;;  %708 = vmatprep.subr.bf16.mxu1 %v3777_v12  ;;  %v3798_v26 = vld [vmem:[#allocation8 + $0x48] ss:$16 sps:$4 sm:$0xff]   ;;  %v3799_v27 = vld [vmem:[#allocation8 + $0x24] ss:$16 sps:$4 sm:$0xff]   ;;  %v3801_v28 = vld [vmem:[#allocation8 + $0x2c] ss:$16 sps:$4 sm:$0xff]  }
  0x8a   : > { %v3803_v29 = vld [vmem:[#allocation8 + $0x20] ss:$16 sps:$4 sm:$0xff]   ;;  %v3804_v30 = vld [vmem:[#allocation8 + $0x28] ss:$16 sps:$4 sm:$0xff]   ;;  %v3805_v31 = vld [vmem:[#allocation8 + $0x4] ss:$16 sps:$4 sm:$0xff]  }
  0x8b   : > { %v3807_v32 = vld [vmem:[#allocation8 + $0xc] ss:$16 sps:$4 sm:$0xff]   ;;  %v3809_v33 = vld [vmem:[#allocation8] ss:$16 sps:$4 sm:$0xff]   ;;  %v3810_v34 = vld [vmem:[#allocation8 + $0x8] ss:$16 sps:$4 sm:$0xff]  }
  0x8c   : > { %636 = vmatpush1.bf16.msra.mxu0 %v3779_v13  ;;  %709 = vmatpush1.bf16.msra.mxu1 %v3780_v14  ;;  %v4477_v35 = vld [vmem:[#allocation10 + $0xe4] ss:$16 sps:$4 sm:$0xff]   ;;  %v4479_v36 = vld [vmem:[#allocation10 + $0xec] ss:$16 sps:$4 sm:$0xff]   ;;  %v4482_v38 = vld [vmem:[#allocation10 + $0xe0] ss:$16 sps:$4 sm:$0xff]  }
  0x8d   : > { %637 = vmatprep.subr.bf16.mxu0 %v3781_v15  ;;  %710 = vmatprep.subr.bf16.mxu1 %v3783_v16  ;;  %v3811_v37 = vld [vmem:[%s4457_s17] sm:$0xff]   ;;  %v4484_v39 = vld [vmem:[#allocation10 + $0xe8] ss:$16 sps:$4 sm:$0xff]   ;;  %v4490_v41 = vld [vmem:[#allocation10 + $0xcc] ss:$16 sps:$4 sm:$0xff]   ;;  %v428_v11 = vshrl.u32 %v427_v10, 7 }
  0x8e   : > { %v4488_v40 = vld [vmem:[#allocation10 + $0xc4] ss:$16 sps:$4 sm:$0xff]   ;;  %v4492_v42 = vld [vmem:[#allocation10 + $0xc0] ss:$16 sps:$4 sm:$0xff]   ;;  %v4496_v43 = vld [vmem:[#allocation10 + $0xc8] ss:$16 sps:$4 sm:$0xff]  }
  0x8f   : > { %v4500_v44 = vld [vmem:[#allocation10 + $0xa4] ss:$16 sps:$4 sm:$0xff]   ;;  %v4502_v45 = vld [vmem:[#allocation10 + $0xac] ss:$16 sps:$4 sm:$0xff]   ;;  %v4507_v47 = vld [vmem:[#allocation10 + $0xa0] ss:$16 sps:$4 sm:$0xff]  }
  0x90   : > { %638 = vmatpush1.bf16.msra.mxu0 %v3785_v17  ;;  %711 = vmatpush1.bf16.msra.mxu1 %v3786_v18  ;;  %v3824_v46 = vld [vmem:[%s4457_s17 + $0x8] sm:$0xff]   ;;  %v4513_v49 = vld [vmem:[#allocation10 + $0x84] ss:$16 sps:$4 sm:$0xff]   ;;  %v4519_v51 = vld [vmem:[#allocation10 + $0x80] ss:$16 sps:$4 sm:$0xff]   ;;  %v437_v12 = vsub.s32 2, %v428_v11 }
  0x91   : > { %639 = vmatprep.subr.bf16.mxu0 %v3787_v19  ;;  %712 = vmatprep.subr.bf16.mxu1 %v3789_v20  ;;  %v4509_v48 = vld [vmem:[#allocation10 + $0xa8] ss:$16 sps:$4 sm:$0xff]   ;;  %v4517_v50 = vld [vmem:[#allocation10 + $0x8c] ss:$16 sps:$4 sm:$0xff]   ;;  %v4525_v53 = vld [vmem:[#allocation10 + $0x64] ss:$16 sps:$4 sm:$0xff]  }
  0x92   : > { %v4521_v52 = vld [vmem:[#allocation10 + $0x88] ss:$16 sps:$4 sm:$0xff]   ;;  %v4529_v54 = vld [vmem:[#allocation10 + $0x6c] ss:$16 sps:$4 sm:$0xff]   ;;  %v3837_v55 = vld [vmem:[%s4457_s17 + $0x10] sm:$0xff]   ;;  %v429_v13 = vsub.s32 0, %v428_v11 }
  0x93   : > { %v4534_v56 = vld [vmem:[#allocation10 + $0x60] ss:$16 sps:$4 sm:$0xff]   ;;  %v4536_v57 = vld [vmem:[#allocation10 + $0x68] ss:$16 sps:$4 sm:$0xff]   ;;  %v4538_v58 = vld [vmem:[#allocation10 + $0x44] ss:$16 sps:$4 sm:$0xff]  }
  0x94   : > { %640 = vmatpush1.bf16.msra.mxu0 %v3791_v21  ;;  %713 = vmatpush1.bf16.msra.mxu1 %v3792_v22  ;;  %v4540_v59 = vld [vmem:[#allocation10 + $0x4c] ss:$16 sps:$4 sm:$0xff]   ;;  %v4546_v60 = vld [vmem:[#allocation10 + $0x40] ss:$16 sps:$4 sm:$0xff]   ;;  %v4548_v61 = vld [vmem:[#allocation10 + $0x48] ss:$16 sps:$4 sm:$0xff]  }
  0x95   : > { %641 = vmatprep.subr.bf16.mxu0 %v3793_v23  ;;  %714 = vmatprep.subr.bf16.mxu1 %v3795_v24  ;;  %v4550_v62 = vld [vmem:[#allocation10 + $0x24] ss:$16 sps:$4 sm:$0xff]   ;;  %v4552_v63 = vld [vmem:[#allocation10 + $0x2c] ss:$16 sps:$4 sm:$0xff]   ;;  %v4561_v1 = vld [vmem:[#allocation10 + $0x20] ss:$16 sps:$4 sm:$0xff]  }
  0x96   : > { %v3850_v0 = vld [vmem:[%s4457_s17 + $0x18] sm:$0xff]   ;;  %v4565_v3 = vld [vmem:[#allocation10 + $0x4] ss:$16 sps:$4 sm:$0xff]   ;;  %v4575_v6 = vld [vmem:[#allocation10] ss:$16 sps:$4 sm:$0xff]   ;;  %v441_v14 = vsub.s32 3, %v428_v11 }
  0x97   : > { %v4563_v2 = vld [vmem:[#allocation10 + $0x28] ss:$16 sps:$4 sm:$0xff]   ;;  %v4567_v5 = vld [vmem:[#allocation10 + $0xc] ss:$16 sps:$4 sm:$0xff]   ;;  %v777_v8 = vld [vmem:[#allocation12] sm:$0xff]  ;;  %v433_v19 = vsub.s32 1, %v428_v11 }
  0x98   : > { %642 = vmatpush1.bf16.msra.mxu0 %v3797_v25  ;;  %715 = vmatpush1.bf16.msra.mxu1 %v3798_v26  ;;  %v4577_v7 = vld [vmem:[#allocation10 + $0x8] ss:$16 sps:$4 sm:$0xff]   ;;  %v779_v9 = vpack.c.bf16 %v777_v8, %v777_v8  ;;  %v425_v15 = vld [vmem:[%s5111_s5] sm:$0xf]  ;;  %s3194_s24 = sshll.u32 %s4259_s23, 4  ;;  %s3654_s10 = sshll.u32 %s4330_s9, 9  ;;  %s3195_s24 = int_to_ptr.vmem [resolvable:$true] %s3194_s24 }
  0x99   : > { %643 = vmatprep.subr.bf16.mxu0 %v3799_v27  ;;  %716 = vmatprep.subr.bf16.mxu1 %v3801_v28  ;;  %v4628_v18 = vrot.slane %v425_v15, %v437_v12  ;;  %v430_v22 = vrot.slane %v425_v15, %v429_v13  ;;  %v4634_v23 = vrot.slane %v425_v15, %v441_v14  ;;  %s3180_s22 = sshll.u32 %s4471_s13, 4  ;;  %s4260_s16 = smov [#allocation14]   ;;  %s5044_s22 = int_to_ptr.vmem [resolvable:$true] %s3180_s22 }
  0x9a   : > { %v434_v26 = vrot.slane %v425_v15, %v433_v19  ;;  %s3205_s25 = sshll.u32 %s4260_s16, 4  ;;  %s5042_s2 = scalar_lea.hbm %s5112_s6, %s3654_s10  ;;  %s3206_s25 = int_to_ptr.vmem [resolvable:$true] %s3205_s25 }
  0x9b   : > { %s4123_s19 = scalar_lea.vmem %s3195_s24, 128  ;;  %p5178_p10 = scmp.eq.s32.totalorder %s4330_s9, 1 }
  0x9c   : > { %644 = vmatpush1.bf16.msra.mxu0 %v3803_v29  ;;  %717 = vmatpush1.bf16.msra.mxu1 %v3804_v30  ;;  %p4124_p2 = scmp.ne.s32.totalorder %s3195_s24, %s4123_s19  ;;  %p4130_p9 = scmp.lt.s32.totalorder %s3195_s24, %s3195_s24 }
  0x9d   : > { %645 = vmatprep.subr.bf16.mxu0 %v3805_v31  ;;  %718 = vmatprep.subr.bf16.mxu1 %v3807_v32  ;;  %p4131_p7 = scmp.lt.s32.totalorder %s4123_s19, %s4123_s19 }
  0x9e   : > { %p4125_p5 = pnand %p4124_p2, %p5178_p10 }
  0x9f   : > { %p4132_p0 = por %p4131_p7, %p4130_p9 }
  0xa0   : > { %646 = vmatpush1.bf16.msra.mxu0 %v3809_v33  ;;  %719 = vmatpush1.bf16.msra.mxu1 %v3810_v34  ;;  %p4126_p6 = pneg %p4125_p5 }
  0xa1   : > { %972 = vmatprep.subr.bf16.mxu0 %v4477_v35  ;;  %1013 = vmatprep.subr.bf16.mxu1 %v4479_v36 }
  0xa2   : > { %p4133_p11 = pnand %p4132_p0, %p4126_p6 }
  0xa3   : > { %664 = vmatmul.mubr.bf16.vlgmr.msra.gmra.mxu0 %v3811_v37  ;;  %737 = vmatmul.mubr.bf16.vlgmr.msra.gmra.mxu1 %v3811_v37 }
  0xa4   : > { %973 = vmatpush1.bf16.msra.mxu0 %v4482_v38  ;;  %1014 = vmatpush1.bf16.msra.mxu1 %v4484_v39 }
  0xa5   : > { %974 = vmatprep.subr.bf16.mxu0 %v4488_v40  ;;  %1015 = vmatprep.subr.bf16.mxu1 %v4490_v41 }
  0xa6   : > { %673 = vmatprep.mubr.bf16.mxu0 %v5119_v4  ;;  %746 = vmatprep.mubr.bf16.mxu1 %v5119_v4 }
  0xa8   : > { %975 = vmatpush1.bf16.msra.mxu0 %v4492_v42  ;;  %1016 = vmatpush1.bf16.msra.mxu1 %v4496_v43 }
  0xa9   : > { %976 = vmatprep.subr.bf16.mxu0 %v4500_v44  ;;  %1017 = vmatprep.subr.bf16.mxu1 %v4502_v45 }
  0xab   : > { %674 = vmatmul.mubr.bf16.gmra.mxu0 %v3824_v46  ;;  %747 = vmatmul.mubr.bf16.gmra.mxu1 %v3824_v46 }
  0xac   : > { %977 = vmatpush1.bf16.msra.mxu0 %v4507_v47  ;;  %1018 = vmatpush1.bf16.msra.mxu1 %v4509_v48 }
  0xad   : > { %978 = vmatprep.subr.bf16.mxu0 %v4513_v49  ;;  %1019 = vmatprep.subr.bf16.mxu1 %v4517_v50 }
  0xae   : > { %683 = vmatprep.mubr.bf16.mxu0 %v5119_v4  ;;  %756 = vmatprep.mubr.bf16.mxu1 %v5119_v4 }
  0xb0   : > { %979 = vmatpush1.bf16.msra.mxu0 %v4519_v51  ;;  %1020 = vmatpush1.bf16.msra.mxu1 %v4521_v52 }
  0xb1   : > { %980 = vmatprep.subr.bf16.mxu0 %v4525_v53  ;;  %1021 = vmatprep.subr.bf16.mxu1 %v4529_v54 }
  0xb3   : > { %684 = vmatmul.mubr.bf16.gmra.mxu0 %v3837_v55  ;;  %757 = vmatmul.mubr.bf16.gmra.mxu1 %v3837_v55 }
  0xb4   : > { %981 = vmatpush1.bf16.msra.mxu0 %v4534_v56  ;;  %1022 = vmatpush1.bf16.msra.mxu1 %v4536_v57 }
  0xb5   : > { %982 = vmatprep.subr.bf16.mxu0 %v4538_v58  ;;  %1023 = vmatprep.subr.bf16.mxu1 %v4540_v59 }
  0xb6   : > { %693 = vmatprep.mubr.bf16.mxu0 %v5119_v4  ;;  %766 = vmatprep.mubr.bf16.mxu1 %v5119_v4 }
  0xb8   : > { %983 = vmatpush1.bf16.msra.mxu0 %v4546_v60  ;;  %1024 = vmatpush1.bf16.msra.mxu1 %v4548_v61 }
  0xb9   : > { %984 = vmatprep.subr.bf16.mxu0 %v4550_v62  ;;  %1025 = vmatprep.subr.bf16.mxu1 %v4552_v63 }
  0xbb   : > { %694 = vmatmul.mubr.bf16.gmra.mxu0 %v3850_v0  ;;  %767 = vmatmul.mubr.bf16.gmra.mxu1 %v3850_v0 }
  0xbc   : > { %985 = vmatpush1.bf16.msra.mxu0 %v4561_v1  ;;  %1026 = vmatpush1.bf16.msra.mxu1 %v4563_v2 }
  0xbd   : > { %986 = vmatprep.subr.bf16.mxu0 %v4565_v3  ;;  %1027 = vmatprep.subr.bf16.mxu1 %v4567_v5 }
  0xbe   : > { %1004 = vmatprep.mubr.bf16.mxu0 %v5119_v4  ;;  %1045 = vmatprep.mubr.bf16.mxu1 %v5119_v4 }
  0xc0   : > { %987 = vmatpush1.bf16.msra.mxu0 %v4575_v6  ;;  %1028 = vmatpush1.bf16.msra.mxu1 %v4577_v7 }
  0xc1   : > { %1270 = vmatprep.subr.bf16.mxu0 %v4477_v35  ;;  %1311 = vmatprep.subr.bf16.mxu1 %v4479_v36 }
  0xc3   : > { %1005 = vmatmul.mubr.bf16.vlgmr.msra.gmra.mxu0 %v779_v9  ;;  %1046 = vmatmul.mubr.bf16.vlgmr.msra.gmra.mxu1 %v779_v9 }
  0xc4   : > { %1271 = vmatpush1.bf16.msra.mxu0 %v4482_v38  ;;  %1312 = vmatpush1.bf16.msra.mxu1 %v4484_v39 }
  0xc5   : > { %1272 = vmatprep.subr.bf16.mxu0 %v4488_v40  ;;  %1313 = vmatprep.subr.bf16.mxu1 %v4490_v41 }
  0xc6   : > { %1302 = vmatprep.mubr.bf16.mxu0 %v5119_v4  ;;  %1343 = vmatprep.mubr.bf16.mxu1 %v5119_v4 }
  0xc8   : > { %1273 = vmatpush1.bf16.msra.mxu0 %v4492_v42  ;;  %1314 = vmatpush1.bf16.msra.mxu1 %v4496_v43 }
  0xc9   : > { %1274 = vmatprep.subr.bf16.mxu0 %v4500_v44  ;;  %1315 = vmatprep.subr.bf16.mxu1 %v4502_v45 }
  0xcc   : > { %1275 = vmatpush1.bf16.msra.mxu0 %v4507_v47  ;;  %1316 = vmatpush1.bf16.msra.mxu1 %v4509_v48 }
  0xcd   : > { %1276 = vmatprep.subr.bf16.mxu0 %v4513_v49  ;;  %1317 = vmatprep.subr.bf16.mxu1 %v4517_v50 }
  0xd0   : > { %1277 = vmatpush1.bf16.msra.mxu0 %v4519_v51  ;;  %1318 = vmatpush1.bf16.msra.mxu1 %v4521_v52 }
  0xd1   : > { %1278 = vmatprep.subr.bf16.mxu0 %v4525_v53  ;;  %1319 = vmatprep.subr.bf16.mxu1 %v4529_v54 }
  0xd4   : > { %1279 = vmatpush1.bf16.msra.mxu0 %v4534_v56  ;;  %1320 = vmatpush1.bf16.msra.mxu1 %v4536_v57 }
  0xd5   : > { %1280 = vmatprep.subr.bf16.mxu0 %v4538_v58  ;;  %1321 = vmatprep.subr.bf16.mxu1 %v4540_v59 }
  0xd8   : > { %1281 = vmatpush1.bf16.msra.mxu0 %v4546_v60  ;;  %1322 = vmatpush1.bf16.msra.mxu1 %v4548_v61 }
  0xd9   : > { %1282 = vmatprep.subr.bf16.mxu0 %v4550_v62  ;;  %1323 = vmatprep.subr.bf16.mxu1 %v4552_v63 }
  0xdc   : > { %1283 = vmatpush1.bf16.msra.mxu0 %v4561_v1  ;;  %1324 = vmatpush1.bf16.msra.mxu1 %v4563_v2 }
  0xdd   : > { %1284 = vmatprep.subr.bf16.mxu0 %v4565_v3  ;;  %1325 = vmatprep.subr.bf16.mxu1 %v4567_v5 }
  0xe0   : > { %1285 = vmatpush1.bf16.msra.mxu0 %v4575_v6  ;;  %1326 = vmatpush1.bf16.msra.mxu1 %v4577_v7 }
  0xe1   : > { %1568 = vmatprep.subr.bf16.mxu0 %v4477_v35  ;;  %1609 = vmatprep.subr.bf16.mxu1 %v4479_v36 }
 0x163   : > { %v4624_v16 = vpop.f32.mrf.mxu0  ;;  %v4626_v17 = vpop.f32.mrf.mxu1 }
 0x165   : > { %v4630_v20 = vpop.f32.mrf.mxu0  ;;  %v4632_v21 = vpop.f32.mrf.mxu1 }
 0x167   : > { %v669_v24 = vpop.f32.mrf.mxu0  ;;  %v742_v25 = vpop.f32.mrf.mxu1 }
 0x168   : > { %v4636_v27 = vadd.f32 %v669_v24, %v430_v22  ;;  %v4639_v28 = vadd.f32 %v742_v25, %v4628_v18 }
 0x169   : > { %v671_v29 = vpop.f32.mrf.mxu0  ;;  %v744_v30 = vpop.f32.mrf.mxu1 }
 0x16a   : > { %v4641_v31 = vadd.f32 %v671_v29, %v434_v26  ;;  %v4644_v32 = vadd.f32 %v744_v30, %v4634_v23 }
 0x16b   : > { %v675_v33 = vpop.f32.mrf.mxu0  ;;  %v748_v34 = vpop.f32.mrf.mxu1 }
 0x16c   : > { %v4646_v37 = vadd.f32 %v675_v33, %v430_v22  ;;  %v4649_v46 = vadd.f32 %v748_v34, %v4628_v18 }
 0x16d   : > { %v677_v55 = vpop.f32.mrf.mxu0  ;;  %v750_v0 = vpop.f32.mrf.mxu1 }
 0x16e   : > { %v4651_v8 = vadd.f32 %v677_v55, %v434_v26  ;;  %v4654_v9 = vadd.f32 %v750_v0, %v4634_v23 }
 0x16f   : > { %v679_v10 = vpop.f32.mrf.mxu0  ;;  %v752_v11 = vpop.f32.mrf.mxu1 }
 0x170   : > { %v4656_v12 = vadd.f32 %v679_v10, %v430_v22  ;;  %v4659_v13 = vadd.f32 %v752_v11, %v4628_v18 }
 0x171   : > { %v681_v14 = vpop.f32.mrf.mxu0  ;;  %v754_v15 = vpop.f32.mrf.mxu1 }
 0x172   : > { %5139 = vst [vmem:[#allocation20_spill] sm:$0xff] %v4656_v12  ;;  %5140 = vst [vmem:[#allocation21_spill] sm:$0xff] %v4659_v13  ;;  %v4661_v19 = vadd.f32 %v681_v14, %v434_v26  ;;  %v4664_v24 = vadd.f32 %v754_v15, %v4634_v23  ;;  %v739_v12 = vadd.f32 %v4626_v17, %v4628_v18  ;;  %v778_v17 = vld [vmem:[#allocation14] sm:$0xff] }
 0x173   : > { %v685_v25 = vpop.f32.mrf.mxu0  ;;  %v758_v29 = vpop.f32.mrf.mxu1 }
 0x174   : > { %5141 = vst [vmem:[#allocation22_spill] sm:$0xff] %v4661_v19  ;;  %5142 = vst [vmem:[#allocation23_spill] sm:$0xff] %v4664_v24  ;;  %v4666_v30 = vadd.f32 %v685_v25, %v430_v22  ;;  %v4669_v33 = vadd.f32 %v758_v29, %v4628_v18 }
 0x175   : > { %v687_v34 = vpop.f32.mrf.mxu0  ;;  %v760_v55 = vpop.f32.mrf.mxu1 }
 0x176   : > { %5143 = vst [vmem:[#allocation24_spill] sm:$0xff] %v4666_v30  ;;  %5144 = vst [vmem:[#allocation25_spill] sm:$0xff] %v4669_v33  ;;  %v4671_v0 = vadd.f32 %v687_v34, %v434_v26  ;;  %v4674_v10 = vadd.f32 %v760_v55, %v4634_v23 }
 0x177   : > { %v689_v11 = vpop.f32.mrf.mxu0  ;;  %v762_v14 = vpop.f32.mrf.mxu1 }
 0x178   : > { %5145 = vst [vmem:[#allocation26_spill] sm:$0xff] %v4671_v0  ;;  %5146 = vst [vmem:[#allocation27_spill] sm:$0xff] %v4674_v10  ;;  %v4676_v4 = vadd.f32 %v689_v11, %v430_v22  ;;  %v4679_v15 = vadd.f32 %v762_v14, %v4628_v18 }
 0x179   : > { %v691_v24 = vpop.f32.mrf.mxu0  ;;  %v764_v25 = vpop.f32.mrf.mxu1 }
 0x17a   : > { %5147 = vst [vmem:[#allocation28_spill] sm:$0xff] %v4676_v4  ;;  %5148 = vst [vmem:[#allocation29_spill] sm:$0xff] %v4679_v15  ;;  %v4681_v30 = vadd.f32 %v691_v24, %v434_v26  ;;  %v4684_v29 = vadd.f32 %v764_v25, %v4634_v23 }
 0x17b   : > { %v695_v33 = vpop.f32.mrf.mxu0  ;;  %v768_v34 = vpop.f32.mrf.mxu1 }
 0x17c   : > { %5149 = vst [vmem:[#allocation30_spill] sm:$0xff] %v4681_v30  ;;  %5150 = vst [vmem:[#allocation31_spill] sm:$0xff] %v4684_v29  ;;  %v4686_v0 = vadd.f32 %v695_v33, %v430_v22  ;;  %v4689_v55 = vadd.f32 %v768_v34, %v4628_v18 }
 0x17d   : > { %v697_v10 = vpop.f32.mrf.mxu0  ;;  %v770_v11 = vpop.f32.mrf.mxu1 }
 0x17e   : > { %5151 = vst [vmem:[#allocation32_spill] sm:$0xff] %v4686_v0  ;;  %5152 = vst [vmem:[#allocation33_spill] sm:$0xff] %v4689_v55  ;;  %v4691_v4 = vadd.f32 %v697_v10, %v434_v26  ;;  %v4694_v14 = vadd.f32 %v770_v11, %v4634_v23  ;;  %v666_v0 = vadd.f32 %v4624_v16, %v430_v22 }
 0x17f   : > { %v699_v15 = vpop.f32.mrf.mxu0  ;;  %v772_v24 = vpop.f32.mrf.mxu1  ;;  %v668_v11 = vadd.f32 %v4630_v20, %v434_v26 }
 0x180   : > { %5153 = vst [vmem:[#allocation34_spill] sm:$0xff] %v4691_v4  ;;  %5154 = vst [vmem:[#allocation35_spill] sm:$0xff] %v4694_v14  ;;  %v4696_v30 = vadd.f32 %v699_v15, %v430_v22  ;;  %v4699_v25 = vadd.f32 %v772_v24, %v4628_v18 }
 0x181   : > { %v701_v29 = vpop.f32.mrf.mxu0  ;;  %v774_v33 = vpop.f32.mrf.mxu1 }
 0x182   : > { %5155 = vst [vmem:[#allocation36_spill] sm:$0xff] %v4696_v30  ;;  %5156 = vst [vmem:[#allocation37_spill] sm:$0xff] %v4699_v25  ;;  %v4702_v34 = vadd.f32 %v701_v29, %v434_v26  ;;  %v4705_v55 = vadd.f32 %v774_v33, %v4634_v23 }
 0x183   : > { %v1006_v10 = vpop.f32.mrf.mxu0  ;;  %v1047_v4 = vpop.f32.mrf.mxu1 }
 0x184   : > { %5157 = vst [vmem:[#allocation38_spill] sm:$0xff] %v4705_v55  ;;  %v1054_v14 = vadd.f32 %v1006_v10, %v666_v0  ;;  %v1056_v33 = vadd.f32 %v1047_v4, %v739_v12  ;;  %v741_v55 = vadd.f32 %v4632_v21, %v4634_v23 }
 0x185   : > { %v1008_v13 = vpop.f32.mrf.mxu0  ;;  %v1049_v15 = vpop.f32.mrf.mxu1 }
 0x186   : > { %v1058_v30 = vmul.f32 0.5, %v1054_v14  ;;  %v1055_v19 = vadd.f32 %v1008_v13, %v668_v11  ;;  %v1057_v20 = vadd.f32 %v1049_v15, %v741_v55 }
 0x187   : > { %v1010_v24 = vpop.f32.mrf.mxu0  ;;  %v1051_v25 = vpop.f32.mrf.mxu1 }
 0x188   : > { %3911 = vtanh.f32 %v1058_v30  ;;  %v1062_v16 = vmul.f32 0.5, %v1055_v19  ;;  %v1067_v26 = vmul.f32 0.5, %v1057_v20 }
 0x189   : > { %v1011_v22 = vpop.f32.mrf.mxu0  ;;  %v1052_v29 = vpop.f32.mrf.mxu1 }
 0x18a   : > { %3913 = vtanh.f32 %v1062_v16  ;;  %v5158_v16 = vmov 0  }
 0x18b   : > { %3915 = vtanh.f32 %v1056_v33 }
 0x18c   : > { %3917 = vtanh.f32 %v1067_v26 }
 0x195   : > { %v3912_v0 = vpop.eup %3911 }
 0x196   : > { %v1060_v14 = vmul.f32 0.5, %v3912_v0 }
 0x197   : > { %v3914_v13 = vpop.eup %3913 }
 0x198   : > { %v1061_v10 = vadd.f32 0.5, %v1060_v14  ;;  %v1064_v25 = vmul.f32 0.5, %v3914_v13  ;;  %v3916_v19 = vpop.eup %3915 }
 0x199   : > { %v3918_v21 = vpop.eup %3917 }
 0x19a   : > { %v1065_v18 = vadd.f32 0.5, %v1064_v25  ;;  %v1072_v11 = vmul.f32 %v3916_v19, %v1061_v10  ;;  %v1069_v23 = vmul.f32 0.5, %v3918_v21 }
 0x19c   : > { %v1071_v30 = vmul.f32 %v1065_v18, %v778_v17  ;;  %v1070_v12 = vadd.f32 0.5, %v1069_v23 }
 0x19e   : > { %v4712_v4 = vadd.f32 %v1072_v11, %v1071_v30 }
 0x1a0   : > { %3919 = vtanh.f32 %v4712_v4 }
 0x1ad   : > { %v3920_v55 = vpop.eup %3919 }
 0x1ae   : > { %v1075_v15 = vmul.f32 %v3920_v55, %v1070_v12 }
 0x1b0   : > { %v1076_v24 = vpack.c.bf16 %v1075_v15, %v1075_v15 }
 0x1b2   : > { %1077 = vst [vmem:[%s4471_s13] sm:$0xf] %v1076_v24  ;;  %1303 = vmatmul.mubr.bf16.vlgmr.msra.gmra.mxu0 %v1076_v24  ;;  %1344 = vmatmul.mubr.bf16.vlgmr.msra.gmra.mxu1 %v1076_v24 }
 0x1b3   : > { %1569 = vmatpush1.bf16.msra.mxu0 %v4482_v38  ;;  %1610 = vmatpush1.bf16.msra.mxu1 %v4484_v39 }
 0x1b4   : > { %1570 = vmatprep.subr.bf16.mxu0 %v4488_v40  ;;  %1611 = vmatprep.subr.bf16.mxu1 %v4490_v41 }
 0x1b5   : > { %1600 = vmatprep.mubr.bf16.mxu0 %v5158_v16  ;;  %1641 = vmatprep.mubr.bf16.mxu1 %v5158_v16 }
 0x1b7   : > { %1571 = vmatpush1.bf16.msra.mxu0 %v4492_v42  ;;  %1612 = vmatpush1.bf16.msra.mxu1 %v4496_v43 }
 0x1b8   : > { %1572 = vmatprep.subr.bf16.mxu0 %v4500_v44  ;;  %1613 = vmatprep.subr.bf16.mxu1 %v4502_v45 }
 0x1bb   : > { %1573 = vmatpush1.bf16.msra.mxu0 %v4507_v47  ;;  %1614 = vmatpush1.bf16.msra.mxu1 %v4509_v48 }
 0x1bc   : > { %1574 = vmatprep.subr.bf16.mxu0 %v4513_v49  ;;  %1615 = vmatprep.subr.bf16.mxu1 %v4517_v50 }
 0x1bf   : > { %1575 = vmatpush1.bf16.msra.mxu0 %v4519_v51  ;;  %1616 = vmatpush1.bf16.msra.mxu1 %v4521_v52 }
 0x1c0   : > { %1576 = vmatprep.subr.bf16.mxu0 %v4525_v53  ;;  %1617 = vmatprep.subr.bf16.mxu1 %v4529_v54 }
 0x1c3   : > { %1577 = vmatpush1.bf16.msra.mxu0 %v4534_v56  ;;  %1618 = vmatpush1.bf16.msra.mxu1 %v4536_v57 }
 0x1c4   : > { %1578 = vmatprep.subr.bf16.mxu0 %v4538_v58  ;;  %1619 = vmatprep.subr.bf16.mxu1 %v4540_v59 }
 0x1c7   : > { %1579 = vmatpush1.bf16.msra.mxu0 %v4546_v60  ;;  %1620 = vmatpush1.bf16.msra.mxu1 %v4548_v61 }
 0x1c8   : > { %1580 = vmatprep.subr.bf16.mxu0 %v4550_v62  ;;  %1621 = vmatprep.subr.bf16.mxu1 %v4552_v63 }
 0x1cb   : > { %1581 = vmatpush1.bf16.msra.mxu0 %v4561_v1  ;;  %1622 = vmatpush1.bf16.msra.mxu1 %v4563_v2 }
 0x1cc   : > { %1582 = vmatprep.subr.bf16.mxu0 %v4565_v3  ;;  %1623 = vmatprep.subr.bf16.mxu1 %v4567_v5 }
 0x1cf   : > { %1583 = vmatpush1.bf16.msra.mxu0 %v4575_v6  ;;  %1624 = vmatpush1.bf16.msra.mxu1 %v4577_v7 }
 0x1d0   : > { %1866 = vmatprep.subr.bf16.mxu0 %v4477_v35  ;;  %1907 = vmatprep.subr.bf16.mxu1 %v4479_v36 }
 0x272   : > { %v1304_v22 = vpop.f32.mrf.mxu0  ;;  %v1345_v29 = vpop.f32.mrf.mxu1 }
 0x273   : > { %v1352_v33 = vadd.f32 %v1304_v22, %v4636_v27  ;;  %v1354_v25 = vadd.f32 %v1345_v29, %v4639_v28 }
 0x274   : > { %v1306_v20 = vpop.f32.mrf.mxu0  ;;  %v1347_v26 = vpop.f32.mrf.mxu1 }
 0x275   : > { %v1356_v0 = vmul.f32 0.5, %v1352_v33  ;;  %v1353_v14 = vadd.f32 %v1306_v20, %v4641_v31  ;;  %v1355_v35 = vadd.f32 %v1347_v26, %v4644_v32  ;;  %v4814_v26 = vld [vmem:[#allocation10 + $0xc4] ss:$16 sps:$4 sm:$0xff]  }
 0x276   : > { %v1308_v13 = vpop.f32.mrf.mxu0  ;;  %v1349_v10 = vpop.f32.mrf.mxu1 }
 0x277   : > { %3921 = vtanh.f32 %v1356_v0  ;;  %v1360_v17 = vmul.f32 0.5, %v1353_v14  ;;  %v1365_v36 = vmul.f32 0.5, %v1355_v35  ;;  %v4816_v0 = vld [vmem:[#allocation10 + $0xcc] ss:$16 sps:$4 sm:$0xff]   ;;  %v4818_v14 = vld [vmem:[#allocation10 + $0xc0] ss:$16 sps:$4 sm:$0xff]  }
 0x278   : > { %v1309_v18 = vpop.f32.mrf.mxu0  ;;  %v1350_v19 = vpop.f32.mrf.mxu1  ;;  %v4820_v13 = vld [vmem:[#allocation10 + $0xc8] ss:$16 sps:$4 sm:$0xff]   ;;  %v4826_v10 = vld [vmem:[#allocation10 + $0xa4] ss:$16 sps:$4 sm:$0xff]   ;;  %v4840_v35 = vld [vmem:[#allocation10 + $0x8c] ss:$16 sps:$4 sm:$0xff]  }
 0x279   : > { %3923 = vtanh.f32 %v1360_v17  ;;  %v4830_v17 = vld [vmem:[#allocation10 + $0xa0] ss:$16 sps:$4 sm:$0xff]   ;;  %v4832_v18 = vld [vmem:[#allocation10 + $0xa8] ss:$16 sps:$4 sm:$0xff]   ;;  %v4838_v19 = vld [vmem:[#allocation10 + $0x84] ss:$16 sps:$4 sm:$0xff]  }
 0x27a   : > { %3925 = vtanh.f32 %v1354_v25  ;;  %v4828_v25 = vld [vmem:[#allocation10 + $0xac] ss:$16 sps:$4 sm:$0xff]  }
 0x27b   : > { %3927 = vtanh.f32 %v1365_v36  ;;  %v4842_v36 = vld [vmem:[#allocation10 + $0x80] ss:$16 sps:$4 sm:$0xff]  }
 0x284   : > { %v3922_v30 = vpop.eup %3921 }
 0x285   : > { %v1358_v27 = vmul.f32 0.5, %v3922_v30  ;;  %v4844_v30 = vld [vmem:[#allocation10 + $0x88] ss:$16 sps:$4 sm:$0xff]  }
 0x286   : > { %v3924_v11 = vpop.eup %3923 }
 0x287   : > { %v1359_v21 = vadd.f32 0.5, %v1358_v27  ;;  %v1362_v23 = vmul.f32 0.5, %v3924_v11  ;;  %v3926_v31 = vpop.eup %3925  ;;  %v4850_v27 = vld [vmem:[#allocation10 + $0x64] ss:$16 sps:$4 sm:$0xff]   ;;  %v4852_v11 = vld [vmem:[#allocation10 + $0x6c] ss:$16 sps:$4 sm:$0xff]  }
 0x288   : > { %v3928_v24 = vpop.eup %3927 }
 0x289   : > { %v1363_v12 = vadd.f32 0.5, %v1362_v23  ;;  %v1370_v55 = vmul.f32 %v3926_v31, %v1359_v21  ;;  %v1367_v22 = vmul.f32 0.5, %v3928_v24  ;;  %v4854_v21 = vld [vmem:[#allocation10 + $0x60] ss:$16 sps:$4 sm:$0xff]   ;;  %v4856_v23 = vld [vmem:[#allocation10 + $0x68] ss:$16 sps:$4 sm:$0xff]  }
 0x28a   : > { %v4862_v31 = vld [vmem:[#allocation10 + $0x44] ss:$16 sps:$4 sm:$0xff]   ;;  %v4876_v24 = vld [vmem:[#allocation10 + $0x2c] ss:$16 sps:$4 sm:$0xff]  }
 0x28b   : > { %v1369_v28 = vmul.f32 %v1363_v12, %v4712_v4  ;;  %v1368_v32 = vadd.f32 0.5, %v1367_v22  ;;  %v4808_v4 = vld [vmem:[#allocation10 + $0xe8] ss:$16 sps:$4 sm:$0xff]   ;;  %v4864_v12 = vld [vmem:[#allocation10 + $0x4c] ss:$16 sps:$4 sm:$0xff]  }
 0x28c   : > { %v4878_v22 = vld [vmem:[#allocation10 + $0x20] ss:$16 sps:$4 sm:$0xff]  }
 0x28d   : > { %v4755_v15 = vadd.f32 %v1370_v55, %v1369_v28  ;;  %v4866_v55 = vld [vmem:[#allocation10 + $0x40] ss:$16 sps:$4 sm:$0xff]   ;;  %v4868_v28 = vld [vmem:[#allocation10 + $0x48] ss:$16 sps:$4 sm:$0xff]  }
 0x28f   : > { %3929 = vtanh.f32 %v4755_v15 }
 0x29c   : > { %v3930_v29 = vpop.eup %3929 }
 0x29d   : > { %v1373_v33 = vmul.f32 %v3930_v29, %v1368_v32  ;;  %v4880_v32 = vld [vmem:[#allocation10 + $0x28] ss:$16 sps:$4 sm:$0xff]   ;;  %v4886_v29 = vld [vmem:[#allocation10 + $0x4] ss:$16 sps:$4 sm:$0xff]  }
 0x29f   : > { %v1374_v20 = vpack.c.bf16 %v1373_v33, %v1373_v33  ;;  %v4888_v33 = vld [vmem:[#allocation10 + $0xc] ss:$16 sps:$4 sm:$0xff]  }
 0x2a1   : > { %1375 = vst [vmem:[%s4471_s13 + $0x4] sm:$0xf] %v1374_v20  ;;  %1601 = vmatmul.mubr.bf16.vlgmr.msra.gmra.mxu0 %v1374_v20  ;;  %1642 = vmatmul.mubr.bf16.vlgmr.msra.gmra.mxu1 %v1374_v20  ;;  %v4890_v20 = vld [vmem:[#allocation10] ss:$16 sps:$4 sm:$0xff]  }
 0x2a2   : > { %1867 = vmatpush1.bf16.msra.mxu0 %v4482_v38  ;;  %1908 = vmatpush1.bf16.msra.mxu1 %v4484_v39 }
 0x2a3   : > { %1868 = vmatprep.subr.bf16.mxu0 %v4488_v40  ;;  %1909 = vmatprep.subr.bf16.mxu1 %v4490_v41 }
 0x2a4   : > { %1898 = vmatprep.mubr.bf16.mxu0 %v5158_v16  ;;  %1939 = vmatprep.mubr.bf16.mxu1 %v5158_v16 }
 0x2a6   : > { %1869 = vmatpush1.bf16.msra.mxu0 %v4492_v42  ;;  %1910 = vmatpush1.bf16.msra.mxu1 %v4496_v43 }
 0x2a7   : > { %1870 = vmatprep.subr.bf16.mxu0 %v4500_v44  ;;  %1911 = vmatprep.subr.bf16.mxu1 %v4502_v45 }
 0x2aa   : > { %1871 = vmatpush1.bf16.msra.mxu0 %v4507_v47  ;;  %1912 = vmatpush1.bf16.msra.mxu1 %v4509_v48 }
 0x2ab   : > { %1872 = vmatprep.subr.bf16.mxu0 %v4513_v49  ;;  %1913 = vmatprep.subr.bf16.mxu1 %v4517_v50 }
 0x2ae   : > { %1873 = vmatpush1.bf16.msra.mxu0 %v4519_v51  ;;  %1914 = vmatpush1.bf16.msra.mxu1 %v4521_v52 }
 0x2af   : > { %1874 = vmatprep.subr.bf16.mxu0 %v4525_v53  ;;  %1915 = vmatprep.subr.bf16.mxu1 %v4529_v54 }
 0x2b2   : > { %1875 = vmatpush1.bf16.msra.mxu0 %v4534_v56  ;;  %1916 = vmatpush1.bf16.msra.mxu1 %v4536_v57 }
 0x2b3   : > { %1876 = vmatprep.subr.bf16.mxu0 %v4538_v58  ;;  %1917 = vmatprep.subr.bf16.mxu1 %v4540_v59 }
 0x2b6   : > { %1877 = vmatpush1.bf16.msra.mxu0 %v4546_v60  ;;  %1918 = vmatpush1.bf16.msra.mxu1 %v4548_v61 }
 0x2b7   : > { %1878 = vmatprep.subr.bf16.mxu0 %v4550_v62  ;;  %1919 = vmatprep.subr.bf16.mxu1 %v4552_v63 }
 0x2ba   : > { %1879 = vmatpush1.bf16.msra.mxu0 %v4561_v1  ;;  %1920 = vmatpush1.bf16.msra.mxu1 %v4563_v2 }
 0x2bb   : > { %1880 = vmatprep.subr.bf16.mxu0 %v4565_v3  ;;  %1921 = vmatprep.subr.bf16.mxu1 %v4567_v5 }
 0x2be   : > { %1881 = vmatpush1.bf16.msra.mxu0 %v4575_v6  ;;  %1922 = vmatpush1.bf16.msra.mxu1 %v4577_v7 }
 0x361   : > { %v1602_v38 = vpop.f32.mrf.mxu0  ;;  %v1643_v39 = vpop.f32.mrf.mxu1 }
 0x362   : > { %v1650_v40 = vadd.f32 %v1602_v38, %v4646_v37  ;;  %v1652_v48 = vadd.f32 %v1643_v39, %v4649_v46  ;;  %v4802_v46 = vld [vmem:[#allocation10 + $0xe4] ss:$16 sps:$4 sm:$0xff]   ;;  %v4892_v38 = vld [vmem:[#allocation10 + $0x8] ss:$16 sps:$4 sm:$0xff]  }
 0x363   : > { %v1604_v41 = vpop.f32.mrf.mxu0  ;;  %v1645_v42 = vpop.f32.mrf.mxu1  ;;  %2164 = vmatprep.subr.bf16.mxu0 %v4802_v46 }
 0x364   : > { %v1654_v43 = vmul.f32 0.5, %v1650_v40  ;;  %v1651_v44 = vadd.f32 %v1604_v41, %v4651_v8  ;;  %v1653_v52 = vadd.f32 %v1645_v42, %v4654_v9  ;;  %v4804_v8 = vld [vmem:[#allocation10 + $0xec] ss:$16 sps:$4 sm:$0xff]   ;;  %v4806_v9 = vld [vmem:[#allocation10 + $0xe0] ss:$16 sps:$4 sm:$0xff]  }
 0x365   : > { %v1606_v45 = vpop.f32.mrf.mxu0  ;;  %v1647_v47 = vpop.f32.mrf.mxu1  ;;  %2205 = vmatprep.subr.bf16.mxu1 %v4804_v8  ;;  %v5159_v41 = vld [vmem:[#allocation20_spill] sm:$0xff] }
 0x366   : > { %3931 = vtanh.f32 %v1654_v43  ;;  %v1658_v49 = vmul.f32 0.5, %v1651_v44  ;;  %v1663_v53 = vmul.f32 0.5, %v1653_v52  ;;  %v5160_v47 = vld [vmem:[#allocation22_spill] sm:$0xff] }
 0x367   : > { %v1607_v50 = vpop.f32.mrf.mxu0  ;;  %v1648_v51 = vpop.f32.mrf.mxu1 }
 0x368   : > { %3933 = vtanh.f32 %v1658_v49  ;;  %v5161_v51 = vld [vmem:[#allocation21_spill] sm:$0xff] }
 0x369   : > { %3935 = vtanh.f32 %v1652_v48 }
 0x36a   : > { %3937 = vtanh.f32 %v1663_v53 }
 0x373   : > { %v3932_v54 = vpop.eup %3931 }
 0x374   : > { %v1656_v56 = vmul.f32 0.5, %v3932_v54 }
 0x375   : > { %v3934_v57 = vpop.eup %3933 }
 0x376   : > { %v1657_v58 = vadd.f32 0.5, %v1656_v56  ;;  %v1660_v59 = vmul.f32 0.5, %v3934_v57  ;;  %v3936_v60 = vpop.eup %3935  ;;  %v5162_v57 = vld [vmem:[#allocation23_spill] sm:$0xff] }
 0x377   : > { %v3938_v2 = vpop.eup %3937 }
 0x378   : > { %v1661_v61 = vadd.f32 0.5, %v1660_v59  ;;  %v1668_v62 = vmul.f32 %v3936_v60, %v1657_v58  ;;  %v1665_v3 = vmul.f32 0.5, %v3938_v2 }
 0x37a   : > { %v1667_v63 = vmul.f32 %v1661_v61, %v4755_v15  ;;  %v1666_v5 = vadd.f32 0.5, %v1665_v3  ;;  %v4874_v15 = vld [vmem:[#allocation10 + $0x24] ss:$16 sps:$4 sm:$0xff]  }
 0x37c   : > { %v4796_v1 = vadd.f32 %v1668_v62, %v1667_v63 }
 0x37e   : > { %3939 = vtanh.f32 %v4796_v1 }
 0x38b   : > { %v3940_v6 = vpop.eup %3939 }
 0x38c   : > { %v1671_v7 = vmul.f32 %v3940_v6, %v1666_v5 }
 0x38e   : > { %v1672_v37 = vpack.c.bf16 %v1671_v7, %v1671_v7 }
 0x390   : > { %1673 = vst [vmem:[%s4471_s13 + $0x8] sm:$0xf] %v1672_v37  ;;  %1899 = vmatmul.mubr.bf16.vlgmr.msra.gmra.mxu0 %v1672_v37  ;;  %1940 = vmatmul.mubr.bf16.vlgmr.msra.gmra.mxu1 %v1672_v37 }
 0x391   : > { %2196 = vmatprep.mubr.bf16.mxu0 %v5158_v16  ;;  %2237 = vmatprep.mubr.bf16.mxu1 %v5158_v16 }
 0x392   : > { %2165 = vmatpush1.bf16.msra.mxu0 %v4806_v9  ;;  %2206 = vmatpush1.bf16.msra.mxu1 %v4808_v4 }
 0x393   : > { %2166 = vmatprep.subr.bf16.mxu0 %v4814_v26  ;;  %2207 = vmatprep.subr.bf16.mxu1 %v4816_v0 }
 0x396   : > { %2167 = vmatpush1.bf16.msra.mxu0 %v4818_v14  ;;  %2208 = vmatpush1.bf16.msra.mxu1 %v4820_v13 }
 0x397   : > { %2168 = vmatprep.subr.bf16.mxu0 %v4826_v10  ;;  %2209 = vmatprep.subr.bf16.mxu1 %v4828_v25 }
 0x39a   : > { %2169 = vmatpush1.bf16.msra.mxu0 %v4830_v17  ;;  %2210 = vmatpush1.bf16.msra.mxu1 %v4832_v18 }
 0x39b   : > { %2170 = vmatprep.subr.bf16.mxu0 %v4838_v19  ;;  %2211 = vmatprep.subr.bf16.mxu1 %v4840_v35 }
 0x39e   : > { %2171 = vmatpush1.bf16.msra.mxu0 %v4842_v36  ;;  %2212 = vmatpush1.bf16.msra.mxu1 %v4844_v30 }
 0x39f   : > { %2172 = vmatprep.subr.bf16.mxu0 %v4850_v27  ;;  %2213 = vmatprep.subr.bf16.mxu1 %v4852_v11 }
 0x3a2   : > { %2173 = vmatpush1.bf16.msra.mxu0 %v4854_v21  ;;  %2214 = vmatpush1.bf16.msra.mxu1 %v4856_v23 }
 0x3a3   : > { %2174 = vmatprep.subr.bf16.mxu0 %v4862_v31  ;;  %2215 = vmatprep.subr.bf16.mxu1 %v4864_v12 }
 0x3a6   : > { %2175 = vmatpush1.bf16.msra.mxu0 %v4866_v55  ;;  %2216 = vmatpush1.bf16.msra.mxu1 %v4868_v28 }
 0x3a7   : > { %2176 = vmatprep.subr.bf16.mxu0 %v4874_v15  ;;  %2217 = vmatprep.subr.bf16.mxu1 %v4876_v24 }
 0x3aa   : > { %2177 = vmatpush1.bf16.msra.mxu0 %v4878_v22  ;;  %2218 = vmatpush1.bf16.msra.mxu1 %v4880_v32 }
 0x3ab   : > { %2178 = vmatprep.subr.bf16.mxu0 %v4886_v29  ;;  %2219 = vmatprep.subr.bf16.mxu1 %v4888_v33 }
 0x3ae   : > { %2179 = vmatpush1.bf16.msra.mxu0 %v4890_v20  ;;  %2220 = vmatpush1.bf16.msra.mxu1 %v4892_v38 }
 0x3af   : > { %2462 = vmatprep.subr.bf16.mxu0 %v4802_v46  ;;  %2503 = vmatprep.subr.bf16.mxu1 %v4804_v8 }
 0x450   : > { %v1900_v39 = vpop.f32.mrf.mxu0  ;;  %v1941_v40 = vpop.f32.mrf.mxu1 }
 0x451   : > { %v1948_v42 = vadd.f32 %v1900_v39, %v5159_v41  ;;  %v1950_v52 = vadd.f32 %v1941_v40, %v5161_v51 }
 0x452   : > { %v1902_v43 = vpop.f32.mrf.mxu0  ;;  %v1943_v44 = vpop.f32.mrf.mxu1 }
 0x453   : > { %v1952_v45 = vmul.f32 0.5, %v1948_v42  ;;  %v1949_v48 = vadd.f32 %v1902_v43, %v5160_v47  ;;  %v1951_v58 = vadd.f32 %v1943_v44, %v5162_v57  ;;  %v5163_v47 = vld [vmem:[#allocation24_spill] sm:$0xff]  ;;  %v5165_v57 = vld [vmem:[#allocation25_spill] sm:$0xff] }
 0x454   : > { %v1904_v49 = vpop.f32.mrf.mxu0  ;;  %v1945_v50 = vpop.f32.mrf.mxu1 }
 0x455   : > { %3941 = vtanh.f32 %v1952_v45  ;;  %v1956_v53 = vmul.f32 0.5, %v1949_v48  ;;  %v1961_v59 = vmul.f32 0.5, %v1951_v58 }
 0x456   : > { %v1905_v54 = vpop.f32.mrf.mxu0  ;;  %v1946_v56 = vpop.f32.mrf.mxu1 }
 0x457   : > { %3943 = vtanh.f32 %v1956_v53 }
 0x458   : > { %3945 = vtanh.f32 %v1950_v52  ;;  %v5164_v52 = vld [vmem:[#allocation26_spill] sm:$0xff] }
 0x459   : > { %3947 = vtanh.f32 %v1961_v59 }
 0x462   : > { %v3942_v60 = vpop.eup %3941 }
 0x463   : > { %v1954_v61 = vmul.f32 0.5, %v3942_v60 }
 0x464   : > { %v3944_v62 = vpop.eup %3943 }
 0x465   : > { %v1955_v63 = vadd.f32 0.5, %v1954_v61  ;;  %v1958_v2 = vmul.f32 0.5, %v3944_v62  ;;  %v3946_v3 = vpop.eup %3945  ;;  %v5166_v62 = vld [vmem:[#allocation27_spill] sm:$0xff] }
 0x466   : > { %v3948_v39 = vpop.eup %3947 }
 0x467   : > { %v1959_v5 = vadd.f32 0.5, %v1958_v2  ;;  %v1966_v6 = vmul.f32 %v3946_v3, %v1955_v63  ;;  %v1963_v40 = vmul.f32 0.5, %v3948_v39 }
 0x469   : > { %v1965_v7 = vmul.f32 %v1959_v5, %v4796_v1  ;;  %v1964_v41 = vadd.f32 0.5, %v1963_v40 }
 0x46b   : > { %v4905_v37 = vadd.f32 %v1966_v6, %v1965_v7 }
 0x46d   : > { %3949 = vtanh.f32 %v4905_v37 }
 0x47a   : > { %v3950_v42 = vpop.eup %3949 }
 0x47b   : > { %v1969_v43 = vmul.f32 %v3950_v42, %v1964_v41 }
 0x47d   : > { %v1970_v44 = vpack.c.bf16 %v1969_v43, %v1969_v43 }
 0x47f   : > { %1971 = vst [vmem:[%s4471_s13 + $0xc] sm:$0xf] %v1970_v44  ;;  %2197 = vmatmul.mubr.bf16.vlgmr.msra.gmra.mxu0 %v1970_v44  ;;  %2238 = vmatmul.mubr.bf16.vlgmr.msra.gmra.mxu1 %v1970_v44 }
 0x480   : > { %2463 = vmatpush1.bf16.msra.mxu0 %v4806_v9  ;;  %2504 = vmatpush1.bf16.msra.mxu1 %v4808_v4 }
 0x481   : > { %2464 = vmatprep.subr.bf16.mxu0 %v4814_v26  ;;  %2505 = vmatprep.subr.bf16.mxu1 %v4816_v0 }
 0x482   : > { %2494 = vmatprep.mubr.bf16.mxu0 %v5158_v16  ;;  %2535 = vmatprep.mubr.bf16.mxu1 %v5158_v16 }
 0x484   : > { %2465 = vmatpush1.bf16.msra.mxu0 %v4818_v14  ;;  %2506 = vmatpush1.bf16.msra.mxu1 %v4820_v13 }
 0x485   : > { %2466 = vmatprep.subr.bf16.mxu0 %v4826_v10  ;;  %2507 = vmatprep.subr.bf16.mxu1 %v4828_v25 }
 0x488   : > { %2467 = vmatpush1.bf16.msra.mxu0 %v4830_v17  ;;  %2508 = vmatpush1.bf16.msra.mxu1 %v4832_v18 }
 0x489   : > { %2468 = vmatprep.subr.bf16.mxu0 %v4838_v19  ;;  %2509 = vmatprep.subr.bf16.mxu1 %v4840_v35 }
 0x48c   : > { %2469 = vmatpush1.bf16.msra.mxu0 %v4842_v36  ;;  %2510 = vmatpush1.bf16.msra.mxu1 %v4844_v30 }
 0x48d   : > { %2470 = vmatprep.subr.bf16.mxu0 %v4850_v27  ;;  %2511 = vmatprep.subr.bf16.mxu1 %v4852_v11 }
 0x490   : > { %2471 = vmatpush1.bf16.msra.mxu0 %v4854_v21  ;;  %2512 = vmatpush1.bf16.msra.mxu1 %v4856_v23 }
 0x491   : > { %2472 = vmatprep.subr.bf16.mxu0 %v4862_v31  ;;  %2513 = vmatprep.subr.bf16.mxu1 %v4864_v12 }
 0x494   : > { %2473 = vmatpush1.bf16.msra.mxu0 %v4866_v55  ;;  %2514 = vmatpush1.bf16.msra.mxu1 %v4868_v28 }
 0x495   : > { %2474 = vmatprep.subr.bf16.mxu0 %v4874_v15  ;;  %2515 = vmatprep.subr.bf16.mxu1 %v4876_v24 }
 0x498   : > { %2475 = vmatpush1.bf16.msra.mxu0 %v4878_v22  ;;  %2516 = vmatpush1.bf16.msra.mxu1 %v4880_v32 }
 0x499   : > { %2476 = vmatprep.subr.bf16.mxu0 %v4886_v29  ;;  %2517 = vmatprep.subr.bf16.mxu1 %v4888_v33 }
 0x49c   : > { %2477 = vmatpush1.bf16.msra.mxu0 %v4890_v20  ;;  %2518 = vmatpush1.bf16.msra.mxu1 %v4892_v38 }
 0x49d   : > { %2760 = vmatprep.subr.bf16.mxu0 %v4802_v46  ;;  %2801 = vmatprep.subr.bf16.mxu1 %v4804_v8 }
 0x53f   : > { %v2198_v1 = vpop.f32.mrf.mxu0  ;;  %v2239_v45 = vpop.f32.mrf.mxu1 }
 0x540   : > { %v2246_v48 = vadd.f32 %v2198_v1, %v5163_v47  ;;  %v2248_v58 = vadd.f32 %v2239_v45, %v5165_v57 }
 0x541   : > { %v2200_v49 = vpop.f32.mrf.mxu0  ;;  %v2241_v50 = vpop.f32.mrf.mxu1 }
 0x542   : > { %v2250_v51 = vmul.f32 0.5, %v2246_v48  ;;  %v2247_v53 = vadd.f32 %v2200_v49, %v5164_v52  ;;  %v2249_v63 = vadd.f32 %v2241_v50, %v5166_v62  ;;  %v5167_v52 = vld [vmem:[#allocation28_spill] sm:$0xff]  ;;  %v5169_v62 = vld [vmem:[#allocation29_spill] sm:$0xff] }
 0x543   : > { %v2202_v54 = vpop.f32.mrf.mxu0  ;;  %v2243_v56 = vpop.f32.mrf.mxu1 }
 0x544   : > { %3951 = vtanh.f32 %v2250_v51  ;;  %v2254_v59 = vmul.f32 0.5, %v2247_v53  ;;  %v2259_v2 = vmul.f32 0.5, %v2249_v63 }
 0x545   : > { %v2203_v60 = vpop.f32.mrf.mxu0  ;;  %v2244_v61 = vpop.f32.mrf.mxu1 }
 0x546   : > { %3953 = vtanh.f32 %v2254_v59 }
 0x547   : > { %3955 = vtanh.f32 %v2248_v58  ;;  %v5168_v58 = vld [vmem:[#allocation30_spill] sm:$0xff] }
 0x548   : > { %3957 = vtanh.f32 %v2259_v2 }
 0x551   : > { %v3952_v3 = vpop.eup %3951 }
 0x552   : > { %v2252_v5 = vmul.f32 0.5, %v3952_v3 }
 0x553   : > { %v3954_v6 = vpop.eup %3953 }
 0x554   : > { %v2253_v7 = vadd.f32 0.5, %v2252_v5  ;;  %v2256_v39 = vmul.f32 0.5, %v3954_v6  ;;  %v3956_v40 = vpop.eup %3955 }
 0x555   : > { %v3958_v1 = vpop.eup %3957 }
 0x556   : > { %v2257_v41 = vadd.f32 0.5, %v2256_v39  ;;  %v2264_v42 = vmul.f32 %v3956_v40, %v2253_v7  ;;  %v2261_v45 = vmul.f32 0.5, %v3958_v1 }
 0x558   : > { %v2263_v43 = vmul.f32 %v2257_v41, %v4905_v37  ;;  %v2262_v47 = vadd.f32 0.5, %v2261_v45 }
 0x55a   : > { %v4948_v44 = vadd.f32 %v2264_v42, %v2263_v43 }
 0x55c   : > { %3959 = vtanh.f32 %v4948_v44 }
 0x569   : > { %v3960_v48 = vpop.eup %3959 }
 0x56a   : > { %v2267_v49 = vmul.f32 %v3960_v48, %v2262_v47 }
 0x56c   : > { %v2268_v50 = vpack.c.bf16 %v2267_v49, %v2267_v49 }
 0x56e   : > { %2269 = vst [vmem:[%s4471_s13 + $0x10] sm:$0xf] %v2268_v50  ;;  %2495 = vmatmul.mubr.bf16.vlgmr.msra.gmra.mxu0 %v2268_v50  ;;  %2536 = vmatmul.mubr.bf16.vlgmr.msra.gmra.mxu1 %v2268_v50 }
 0x56f   : > { %2761 = vmatpush1.bf16.msra.mxu0 %v4806_v9  ;;  %2802 = vmatpush1.bf16.msra.mxu1 %v4808_v4 }
 0x570   : > { %2762 = vmatprep.subr.bf16.mxu0 %v4814_v26  ;;  %2803 = vmatprep.subr.bf16.mxu1 %v4816_v0 }
 0x571   : > { %2792 = vmatprep.mubr.bf16.mxu0 %v5158_v16  ;;  %2833 = vmatprep.mubr.bf16.mxu1 %v5158_v16 }
 0x573   : > { %2763 = vmatpush1.bf16.msra.mxu0 %v4818_v14  ;;  %2804 = vmatpush1.bf16.msra.mxu1 %v4820_v13 }
 0x574   : > { %2764 = vmatprep.subr.bf16.mxu0 %v4826_v10  ;;  %2805 = vmatprep.subr.bf16.mxu1 %v4828_v25 }
 0x577   : > { %2765 = vmatpush1.bf16.msra.mxu0 %v4830_v17  ;;  %2806 = vmatpush1.bf16.msra.mxu1 %v4832_v18 }
 0x578   : > { %2766 = vmatprep.subr.bf16.mxu0 %v4838_v19  ;;  %2807 = vmatprep.subr.bf16.mxu1 %v4840_v35 }
 0x57b   : > { %2767 = vmatpush1.bf16.msra.mxu0 %v4842_v36  ;;  %2808 = vmatpush1.bf16.msra.mxu1 %v4844_v30 }
 0x57c   : > { %2768 = vmatprep.subr.bf16.mxu0 %v4850_v27  ;;  %2809 = vmatprep.subr.bf16.mxu1 %v4852_v11 }
 0x57f   : > { %2769 = vmatpush1.bf16.msra.mxu0 %v4854_v21  ;;  %2810 = vmatpush1.bf16.msra.mxu1 %v4856_v23 }
 0x580   : > { %2770 = vmatprep.subr.bf16.mxu0 %v4862_v31  ;;  %2811 = vmatprep.subr.bf16.mxu1 %v4864_v12 }
 0x583   : > { %2771 = vmatpush1.bf16.msra.mxu0 %v4866_v55  ;;  %2812 = vmatpush1.bf16.msra.mxu1 %v4868_v28 }
 0x584   : > { %2772 = vmatprep.subr.bf16.mxu0 %v4874_v15  ;;  %2813 = vmatprep.subr.bf16.mxu1 %v4876_v24 }
 0x587   : > { %2773 = vmatpush1.bf16.msra.mxu0 %v4878_v22  ;;  %2814 = vmatpush1.bf16.msra.mxu1 %v4880_v32 }
 0x588   : > { %2774 = vmatprep.subr.bf16.mxu0 %v4886_v29  ;;  %2815 = vmatprep.subr.bf16.mxu1 %v4888_v33 }
 0x58b   : > { %2775 = vmatpush1.bf16.msra.mxu0 %v4890_v20  ;;  %2816 = vmatpush1.bf16.msra.mxu1 %v4892_v38 }
 0x58c   : > { %3058 = vmatprep.subr.bf16.mxu0 %v4802_v46  ;;  %3099 = vmatprep.subr.bf16.mxu1 %v4804_v8  ;;  %v5170_v46 = vld [vmem:[#allocation31_spill] sm:$0xff] }
 0x62e   : > { %v2496_v37 = vpop.f32.mrf.mxu0  ;;  %v2537_v51 = vpop.f32.mrf.mxu1 }
 0x62f   : > { %v2544_v53 = vadd.f32 %v2496_v37, %v5167_v52  ;;  %v2546_v63 = vadd.f32 %v2537_v51, %v5169_v62 }
 0x630   : > { %v2498_v54 = vpop.f32.mrf.mxu0  ;;  %v2539_v56 = vpop.f32.mrf.mxu1 }
 0x631   : > { %v2548_v57 = vmul.f32 0.5, %v2544_v53  ;;  %v2545_v59 = vadd.f32 %v2498_v54, %v5168_v58  ;;  %v2547_v8 = vadd.f32 %v2539_v56, %v5170_v46 }
 0x632   : > { %v2500_v60 = vpop.f32.mrf.mxu0  ;;  %v2541_v61 = vpop.f32.mrf.mxu1 }
 0x633   : > { %3961 = vtanh.f32 %v2548_v57  ;;  %v2552_v2 = vmul.f32 0.5, %v2545_v59  ;;  %v2557_v6 = vmul.f32 0.5, %v2547_v8  ;;  %v5175_v60 = vld [vmem:[#allocation36_spill] sm:$0xff]  ;;  %v5176_v8 = vld [vmem:[#allocation37_spill] sm:$0xff] }
 0x634   : > { %v2501_v3 = vpop.f32.mrf.mxu0  ;;  %v2542_v5 = vpop.f32.mrf.mxu1 }
 0x635   : > { %3963 = vtanh.f32 %v2552_v2 }
 0x636   : > { %3965 = vtanh.f32 %v2546_v63 }
 0x637   : > { %3967 = vtanh.f32 %v2557_v6 }
 0x640   : > { %v3962_v7 = vpop.eup %3961 }
 0x641   : > { %v2550_v39 = vmul.f32 0.5, %v3962_v7 }
 0x642   : > { %v3964_v40 = vpop.eup %3963 }
 0x643   : > { %v2551_v41 = vadd.f32 0.5, %v2550_v39  ;;  %v2554_v42 = vmul.f32 0.5, %v3964_v40  ;;  %v3966_v43 = vpop.eup %3965 }
 0x644   : > { %v3968_v49 = vpop.eup %3967 }
 0x645   : > { %v2555_v1 = vadd.f32 0.5, %v2554_v42  ;;  %v2562_v45 = vmul.f32 %v3966_v43, %v2551_v41  ;;  %v2559_v50 = vmul.f32 0.5, %v3968_v49  ;;  %v5177_v41 = vld [vmem:[#allocation38_spill] sm:$0xff] }
 0x647   : > { %v2561_v47 = vmul.f32 %v2555_v1, %v4948_v44  ;;  %v2560_v37 = vadd.f32 0.5, %v2559_v50 }
 0x649   : > { %v4991_v48 = vadd.f32 %v2562_v45, %v2561_v47 }
 0x64b   : > { %3969 = vtanh.f32 %v4991_v48 }
 0x658   : > { %v3970_v51 = vpop.eup %3969 }
 0x659   : > { %v2565_v52 = vmul.f32 %v3970_v51, %v2560_v37 }
 0x65b   : > { %v2566_v53 = vpack.c.bf16 %v2565_v52, %v2565_v52 }
 0x65d   : > { %2567 = vst [vmem:[%s4471_s13 + $0x14] sm:$0xf] %v2566_v53  ;;  %2793 = vmatmul.mubr.bf16.vlgmr.msra.gmra.mxu0 %v2566_v53  ;;  %2834 = vmatmul.mubr.bf16.vlgmr.msra.gmra.mxu1 %v2566_v53 }
 0x65e   : > { %3059 = vmatpush1.bf16.msra.mxu0 %v4806_v9  ;;  %3100 = vmatpush1.bf16.msra.mxu1 %v4808_v4  ;;  %v5171_v4 = vld [vmem:[#allocation32_spill] sm:$0xff] }
 0x65f   : > { %3060 = vmatprep.subr.bf16.mxu0 %v4814_v26  ;;  %3101 = vmatprep.subr.bf16.mxu1 %v4816_v0 }
 0x660   : > { %3090 = vmatprep.mubr.bf16.mxu0 %v5158_v16  ;;  %3131 = vmatprep.mubr.bf16.mxu1 %v5158_v16 }
 0x662   : > { %3061 = vmatpush1.bf16.msra.mxu0 %v4818_v14  ;;  %3102 = vmatpush1.bf16.msra.mxu1 %v4820_v13 }
 0x663   : > { %3062 = vmatprep.subr.bf16.mxu0 %v4826_v10  ;;  %3103 = vmatprep.subr.bf16.mxu1 %v4828_v25  ;;  %v5172_v10 = vld [vmem:[#allocation34_spill] sm:$0xff] }
 0x666   : > { %3063 = vmatpush1.bf16.msra.mxu0 %v4830_v17  ;;  %3104 = vmatpush1.bf16.msra.mxu1 %v4832_v18 }
 0x667   : > { %3064 = vmatprep.subr.bf16.mxu0 %v4838_v19  ;;  %3105 = vmatprep.subr.bf16.mxu1 %v4840_v35  ;;  %v5173_v19 = vld [vmem:[#allocation33_spill] sm:$0xff] }
 0x66a   : > { %3065 = vmatpush1.bf16.msra.mxu0 %v4842_v36  ;;  %3106 = vmatpush1.bf16.msra.mxu1 %v4844_v30 }
 0x66b   : > { %3066 = vmatprep.subr.bf16.mxu0 %v4850_v27  ;;  %3107 = vmatprep.subr.bf16.mxu1 %v4852_v11  ;;  %v5174_v11 = vld [vmem:[#allocation35_spill] sm:$0xff] }
 0x66e   : > { %3067 = vmatpush1.bf16.msra.mxu0 %v4854_v21  ;;  %3108 = vmatpush1.bf16.msra.mxu1 %v4856_v23 }
 0x66f   : > { %3068 = vmatprep.subr.bf16.mxu0 %v4862_v31  ;;  %3109 = vmatprep.subr.bf16.mxu1 %v4864_v12 }
 0x672   : > { %3069 = vmatpush1.bf16.msra.mxu0 %v4866_v55  ;;  %3110 = vmatpush1.bf16.msra.mxu1 %v4868_v28 }
 0x673   : > { %3070 = vmatprep.subr.bf16.mxu0 %v4874_v15  ;;  %3111 = vmatprep.subr.bf16.mxu1 %v4876_v24 }
 0x676   : > { %3071 = vmatpush1.bf16.msra.mxu0 %v4878_v22  ;;  %3112 = vmatpush1.bf16.msra.mxu1 %v4880_v32 }
 0x677   : > { %3072 = vmatprep.subr.bf16.mxu0 %v4886_v29  ;;  %3113 = vmatprep.subr.bf16.mxu1 %v4888_v33 }
 0x67a   : > { %3073 = vmatpush1.bf16.msra.mxu0 %v4890_v20  ;;  %3114 = vmatpush1.bf16.msra.mxu1 %v4892_v38 }
 0x71d   : > { %v2794_v16 = vpop.f32.mrf.mxu0  ;;  %v2835_v9 = vpop.f32.mrf.mxu1 }
 0x71e   : > { %v2842_v26 = vadd.f32 %v2794_v16, %v5171_v4  ;;  %v2844_v35 = vadd.f32 %v2835_v9, %v5173_v19 }
 0x71f   : > { %v2796_v0 = vpop.f32.mrf.mxu0  ;;  %v2837_v14 = vpop.f32.mrf.mxu1 }
 0x720   : > { %v2846_v13 = vmul.f32 0.5, %v2842_v26  ;;  %v2843_v25 = vadd.f32 %v2796_v0, %v5172_v10  ;;  %v2845_v21 = vadd.f32 %v2837_v14, %v5174_v11 }
 0x721   : > { %v2798_v17 = vpop.f32.mrf.mxu0  ;;  %v2839_v18 = vpop.f32.mrf.mxu1 }
 0x722   : > { %3971 = vtanh.f32 %v2846_v13  ;;  %v2850_v36 = vmul.f32 0.5, %v2843_v25  ;;  %v2855_v23 = vmul.f32 0.5, %v2845_v21 }
 0x723   : > { %v2799_v30 = vpop.f32.mrf.mxu0  ;;  %v2840_v27 = vpop.f32.mrf.mxu1 }
 0x724   : > { %3973 = vtanh.f32 %v2850_v36 }
 0x725   : > { %3975 = vtanh.f32 %v2844_v35 }
 0x726   : > { %3977 = vtanh.f32 %v2855_v23 }
 0x72f   : > { %v3972_v31 = vpop.eup %3971 }
 0x730   : > { %v2848_v12 = vmul.f32 0.5, %v3972_v31 }
 0x731   : > { %v3974_v55 = vpop.eup %3973 }
 0x732   : > { %v2849_v28 = vadd.f32 0.5, %v2848_v12  ;;  %v2852_v15 = vmul.f32 0.5, %v3974_v55  ;;  %v3976_v24 = vpop.eup %3975 }
 0x733   : > { %v3978_v20 = vpop.eup %3977 }
 0x734   : > { %v2853_v22 = vadd.f32 0.5, %v2852_v15  ;;  %v2860_v32 = vmul.f32 %v3976_v24, %v2849_v28  ;;  %v2857_v38 = vmul.f32 0.5, %v3978_v20 }
 0x736   : > { %v2859_v29 = vmul.f32 %v2853_v22, %v4991_v48  ;;  %v2858_v44 = vadd.f32 0.5, %v2857_v38 }
 0x738   : > { %v2861_v33 = vadd.f32 %v2860_v32, %v2859_v29 }
 0x73a   : > { %3979 = vtanh.f32 %v2861_v33 }
 0x747   : > { %v3980_v54 = vpop.eup %3979 }
 0x748   : > { %v2863_v56 = vmul.f32 %v3980_v54, %v2858_v44 }
 0x74a   : > { %v2864_v57 = vpack.c.bf16 %v2863_v56, %v2863_v56 }
 0x74c   : > { %2865 = vst [vmem:[%s4471_s13 + $0x18] sm:$0xf] %v2864_v57  ;;  %3091 = vmatmul.mubr.bf16.vlgmr.msra.gmra.mxu0 %v2864_v57  ;;  %3132 = vmatmul.mubr.bf16.vlgmr.msra.gmra.mxu1 %v2864_v57 }
 0x80c   : > { %v3092_v58 = vpop.f32.mrf.mxu0  ;;  %v3133_v59 = vpop.f32.mrf.mxu1 }
 0x80d   : > { %v3140_v61 = vadd.f32 %v3092_v58, %v5175_v60  ;;  %v3142_v6 = vadd.f32 %v3133_v59, %v5176_v8 }
 0x80e   : > { %v3094_v62 = vpop.f32.mrf.mxu0  ;;  %v3135_v63 = vpop.f32.mrf.mxu1 }
 0x80f   : > { %v3144_v2 = vmul.f32 0.5, %v3140_v61  ;;  %v3141_v3 = vadd.f32 %v3094_v62, %v4702_v34  ;;  %v3143_v42 = vadd.f32 %v3135_v63, %v5177_v41 }
 0x810   : > { %v3096_v5 = vpop.f32.mrf.mxu0  ;;  %v3137_v46 = vpop.f32.mrf.mxu1 }
 0x811   : > { %3981 = vtanh.f32 %v3144_v2  ;;  %v3148_v7 = vmul.f32 0.5, %v3141_v3  ;;  %v3153_v43 = vmul.f32 0.5, %v3143_v42 }
 0x812   : > { %v3097_v39 = vpop.f32.mrf.mxu0  ;;  %v3138_v40 = vpop.f32.mrf.mxu1 }
 0x813   : > { %3983 = vtanh.f32 %v3148_v7 }
 0x814   : > { %3985 = vtanh.f32 %v3142_v6 }
 0x815   : > { %3987 = vtanh.f32 %v3153_v43 }
 0x81e   : > { %v3982_v1 = vpop.eup %3981 }
 0x81f   : > { %v3146_v45 = vmul.f32 0.5, %v3982_v1 }
 0x820   : > { %v3984_v47 = vpop.eup %3983 }
 0x821   : > { %v3147_v48 = vadd.f32 0.5, %v3146_v45  ;;  %v3150_v34 = vmul.f32 0.5, %v3984_v47  ;;  %v3986_v49 = vpop.eup %3985 }
 0x822   : > { %v3988_v53 = vpop.eup %3987 }
 0x823   : > { %v3151_v50 = vadd.f32 0.5, %v3150_v34  ;;  %v3158_v37 = vmul.f32 %v3986_v49, %v3147_v48  ;;  %v3155_v16 = vmul.f32 0.5, %v3988_v53 }
 0x825   : > { %v3157_v51 = vmul.f32 %v3151_v50, %v2861_v33  ;;  %v3156_v9 = vadd.f32 0.5, %v3155_v16 }
 0x827   : > { %v3159_v52 = vadd.f32 %v3158_v37, %v3157_v51 }
 0x829   : > { %3989 = vtanh.f32 %v3159_v52  ;;  %3165 = vst [vmem:[#allocation14] sm:$0xff] %v3159_v52 }
 0x836   : > { %v3990_v4 = vpop.eup %3989 }
 0x837   : > { %v3161_v26 = vmul.f32 %v3990_v4, %v3156_v9 }
 0x839   : > { %v3162_v0 = vpack.c.bf16 %v3161_v26, %v3161_v26  ;;  %3164 = vst [vmem:[#allocation12] sm:$0xff] %v3161_v26 }
 0x83a   : > { %4136 = shalt.err (!%p4133_p11)
}
 0x83b   : > { %p5179_p4 = pmov %p5178_p10  ;;  %3163 = vst [vmem:[%s4471_s13 + $0x1c] sm:$0xf] %v3162_v0  ;;  %s4147_s21 = scalar_lea.vmem %s3206_s25, 128 }
 0x83c   : > { %p4148_p12 = scmp.ne.s32.totalorder %s3206_s25, %s4147_s21  ;;  %p4154_p13 = scmp.lt.s32.totalorder %s3206_s25, %s3206_s25 }
 0x83d   : > { %3675 = dma.vmem_to_hbm [thread:$0]  (%p5179_p4), %s3195_s24, 128, %s5113_s7, [#allocation13]  }
 0x83e   : > { %p5180_p3 = pmov %p5179_p4  ;;  %p4155_p2 = scmp.lt.s32.totalorder %s4147_s21, %s4147_s21 }
 0x840   : > { %p4149_p8 = pnand %p4148_p12, %p5180_p3  ;;  %p4156_p10 = por %p4155_p2, %p4154_p13 }
 0x842   : > { %p4150_p1 = pneg %p4149_p8 }
 0x844   : > { %p4157_p5 = pnand %p4156_p10, %p4150_p1 }
 0x846   : > { %4160 = shalt.err (!%p4157_p5)
}
 0x847   : > { %p5181_p6 = pmov %p5180_p3  ;;  %s3167_s13 = scalar_lea.sflag [#allocation4], %s4453_s1 }
 0x848   : > { %s4171_s24 = scalar_lea.vmem %s5044_s22, 512  ;;  %p5182_p7 = scmp.ne.s32.totalorder %s5130_s14, 0 }
 0x849   : > { %3677 = dma.vmem_to_hbm [thread:$0]  (%p5181_p6), %s3206_s25, 128, %s5114_s8, [#allocation13]  }
 0x84a   : > { %p4172_p9 = scmp.ne.s32.totalorder %s5044_s22, %s4171_s24  ;;  %s4261_s16 = smov [#allocation11]  }
 0x84b   : > { %s4175_s18 = sshll.u32 %s4261_s16, 4  ;;  %s4176_s18 = int_to_ptr.vmem [resolvable:$false] %s4175_s18 }
 0x84c   : > { %p4173_p0 = pnand %p4172_p9, %p5182_p7  ;;  %s4177_s26 = scalar_lea.vmem %s4176_s18, 1024 }
 0x84d   : > { %p4178_p4 = scmp.lt.s32.totalorder %s5044_s22, %s4176_s18  ;;  %p4179_p12 = scmp.lt.s32.totalorder %s4177_s26, %s4171_s24 }
 0x84e   : > { %p4174_p11 = pneg %p4173_p0 }
 0x84f   : > { %p4180_p3 = por %p4179_p12, %p4178_p4 }
 0x851   : > { %p4181_p8 = pnand %p4180_p3, %p4174_p11 }
 0x853   : > { %4184 = shalt.err (!%p4181_p8)
}
 0x854   : > { %s4185_s25 = scalar_lea.hbm %s5042_s2, 512  ;;  %s4189_s11 = scalar_lea.hbm %s5112_s6, 1024 }
 0x855   : > { %p4186_p1 = scmp.ne.s32.totalorder %s5042_s2, %s4185_s25  ;;  %p4190_p10 = scmp.lt.s32.totalorder %s5042_s2, %s5112_s6 }
 0x856   : > { %p4191_p5 = scmp.lt.s32.totalorder %s4189_s11, %s4185_s25 }
 0x857   : > { %p4187_p13 = pnand %p4186_p1, %p5182_p7 }
 0x858   : > { %p4192_p6 = por %p4191_p5, %p4190_p10 }
 0x859   : > { %p4188_p2 = pneg %p4187_p13 }
 0x85b   : > { %p4193_p9 = pnand %p4192_p6, %p4188_p2 }
 0x85d   : > { %4196 = shalt.err (!%p4193_p9)
}
 0x85e   : > { %s4262_s10 = smov 64   ;;  %s4263_s24 = smov 4  }
 0x85f   : > { %3673 = dma.vmem_to_hbm [thread:$0]  (%p5182_p7), %s5044_s22, 512, %s5042_s2, %s3167_s13, %s4262_s10, %s4262_s10, %s4263_s24  }
 0x860   : > { %p5183_p0 = scmp.eq.s32.totalorder %s4330_s9, 1 }
 0x862   : > { %4226 = dma.done.wait (%p5183_p0), [#allocation13], 256   ;;  %p5184_p11 = pmov %p5183_p0 }
 0x864   : > { %4228 = vsyncadd (%p5184_p11), [#allocation13], 4294967040 }
 0x865 PF: > { %s3225_s16 = sand.u32 1, %s4235_s27   ;;  %p5185_p4 = scmp.ne.s32.totalorder %s5124_s12, 0 }
 0x866   : > { %p5186_p12 = scmp.ge.s32.totalorder %s4247_s30, 2  ;;  %s3226_s18 = scalar_lea.sflag [#allocation4], %s3225_s16 }
 0x868   : > { %p3701_p3 = pnand %p5186_p12, %p5185_p4 }
 0x86a   : > { %p3702_p8 = pneg %p3701_p3 }
 0x86c   : > { %4230 = dma.done.wait (%p3702_p8), %s3226_s18, 512  }
 0x86d   : > { %4232 = vsyncadd (%p3702_p8), %s3226_s18, 4294966784  ;;  %p25_p7 = scmp.ge.s32.totalorder %s4398_s20, 4   ;;  %s5187_s27 = smov %s4239_s28 }
 0x86e   : > { %s5188_s28 = smov %s4243_s29  ;;  %s5189_s29 = smov %s4414_s15 }
 0x86f   : > { %s5190_s30 = smov %s4398_s20  ;;  %27 = sbr.rel (!%p25_p7) target bundleno = 11 (0xb), region = 125 }
 0x874   :  { %3231 = vsyncpa [#allocation3], 1 }
 0x875   :  { %3233 = vsyncpa [#allocation3 + $0x1], 1 }
 0x876   :  { %3234 = vsyncpa [#allocation6], 1 }
 0x877   :  { %3235 = vsyncpa [#allocation9], 1 }
 0x878   :  { %3236 = vsyncpa [#allocation4], 1 }
 0x879   :  { %3238 = vsyncpa [#allocation4 + $0x1], 1 }
 0x87a   :  { %3239 = vsyncpa [#allocation13], 1 }

</bundles_post_ra>
